<compile_context>
chip_gen: v5e
topology: v5e:2x2
jax: 0.10.0
libtpu: 0.0.40
codegen_flags: <defaults>
</compile_context>

<pallas_src>
import math

import jax
import jax.numpy as jnp
from jax import lax
from jax.experimental import pallas as pl
from jax.experimental.pallas import tpu as pltpu  # noqa: F401  (TPU backend assumed)

# ---------------- config (small synthetic XLM-R-like encoder) ----------------
VOCAB = 100
HIDDEN = 32
N_HEADS = 4
HEAD_DIM = HIDDEN // N_HEADS
N_LAYERS = 2
INTERMEDIATE = 64
MAX_POS = 40
PAD_IDX = 1            # XLM-R padding_idx
LN_EPS = 1e-5
MASK_NEG = -1.0e9      # large finite additive mask (avoids -inf/NaN corners)


# ------------------------------- kernel helpers -------------------------------
def _gelu(x):
    # HF "gelu" = exact erf-based GELU
    return 0.5 * x * (1.0 + lax.erf(x * (1.0 / math.sqrt(2.0))))


def _layernorm(x, g, b):
    mu = jnp.mean(x, axis=-1, keepdims=True)
    var = jnp.mean((x - mu) ** 2, axis=-1, keepdims=True)
    return (x - mu) * lax.rsqrt(var + LN_EPS) * g + b


# --------------------------------- fused kernel --------------------------------
def encoder_kernel(x_ref, bias_ref, embln_ref, wqkvo_ref, w1_ref, w2_ref,
                   vecs_ref, o_ref):
    """Whole encoder forward on one VMEM-resident block.

    x_ref     : (B*S, H)       summed embeddings (word+pos+type), pre-LN
    bias_ref  : (B*S, B*S)     additive attention bias (block-diag + key pad)
    embln_ref : (2, H)         embedding LN gamma/beta
    wqkvo_ref : (L, H, 4H)     [Wq*scale | Wk | Wv | Wo] per layer (lane-dense)
    w1_ref    : (L, H, I)
    w2_ref    : (L, I, H)
    vecs_ref  : (L, 8, 3H)     rows: bqkv(scaled q), bo, aln_g, aln_b, b1, b2,
                               oln_g, oln_b
    o_ref     : (B*S, H)       last_hidden_state (flattened)
    """
    H, I, HD = HIDDEN, INTERMEDIATE, HEAD_DIM

    x = _layernorm(x_ref[...], embln_ref[0], embln_ref[1])     # (BS, H)
    bias = bias_ref[...]                                        # (BS, BS)

    for l in range(N_LAYERS):                                   # static unroll
        W = wqkvo_ref[l]                                        # (H, 4H)
        vl = vecs_ref[l]                                        # (8, 3H)

        # ---- self-attention: single lane-aligned QKV(+O) projection ----
        proj = jnp.dot(x, W, preferred_element_type=jnp.float32)   # (BS, 4H)
        qkv = proj[:, :3 * H] + vl[0]                               # (BS, 3H)
        q, k, v = qkv[:, :H], qkv[:, H:2 * H], qkv[:, 2 * H:]

        ctx_heads = []
        for h in range(N_HEADS):                                # static unroll
            sl = slice(h * HD, (h + 1) * HD)
            # scale already folded into Wq/bq at pack time
            s = jnp.dot(q[:, sl], k[:, sl].T,
                        preferred_element_type=jnp.float32) + bias
            s = s - jnp.max(s, axis=-1, keepdims=True)
            p = jnp.exp(s)
            p = p * pl.reciprocal(jnp.sum(p, axis=-1, keepdims=True), approx=True)
            ctx_heads.append(jnp.dot(p, v[:, sl],
                                     preferred_element_type=jnp.float32))
        ctx = jnp.concatenate(ctx_heads, axis=-1)               # (BS, H)

        attn = jnp.dot(ctx, W[:, 3 * H:],
                       preferred_element_type=jnp.float32) + vl[1, :H]
        x = _layernorm(x + attn, vl[2, :H], vl[3, :H])

        # ---- feed-forward ----
        hmid = _gelu(jnp.dot(x, w1_ref[l],
                             preferred_element_type=jnp.float32) + vl[4, :I])
        ffo = jnp.dot(hmid, w2_ref[l],
                      preferred_element_type=jnp.float32) + vl[5, :H]
        x = _layernorm(x + ffo, vl[6, :H], vl[7, :H])

    o_ref[...] = x


# ------------------------------ parameter init ---------------------------------
def init_params(key):
    def nrm(k, shape):
        return 0.02 * jax.random.normal(k, shape, dtype=jnp.float32)

    keys = jax.random.split(key, 4 + N_LAYERS)
    params = {
        "word_emb": nrm(keys[0], (VOCAB, HIDDEN)),
        "pos_emb": nrm(keys[1], (MAX_POS, HIDDEN)),
        "type_emb": nrm(keys[2], (1, HIDDEN)),
        "emb_ln_g": jnp.ones((HIDDEN,), jnp.float32),
        "emb_ln_b": jnp.zeros((HIDDEN,), jnp.float32),
        "layers": [],
    }
    for li in range(N_LAYERS):
        lk = jax.random.split(keys[4 + li], 6)
        params["layers"].append({
            "wq": nrm(lk[0], (HIDDEN, HIDDEN)), "bq": jnp.zeros((HIDDEN,), jnp.float32),
            "wk": nrm(lk[1], (HIDDEN, HIDDEN)), "bk": jnp.zeros((HIDDEN,), jnp.float32),
            "wv": nrm(lk[2], (HIDDEN, HIDDEN)), "bv": jnp.zeros((HIDDEN,), jnp.float32),
            "wo": nrm(lk[3], (HIDDEN, HIDDEN)), "bo": jnp.zeros((HIDDEN,), jnp.float32),
            "attn_ln_g": jnp.ones((HIDDEN,), jnp.float32),
            "attn_ln_b": jnp.zeros((HIDDEN,), jnp.float32),
            "w1": nrm(lk[4], (HIDDEN, INTERMEDIATE)),
            "b1": jnp.zeros((INTERMEDIATE,), jnp.float32),
            "w2": nrm(lk[5], (INTERMEDIATE, HIDDEN)),
            "b2": jnp.zeros((HIDDEN,), jnp.float32),
            "out_ln_g": jnp.ones((HIDDEN,), jnp.float32),
            "out_ln_b": jnp.zeros((HIDDEN,), jnp.float32),
        })
    return params


# ------------------------------- weight packing ---------------------------------
def _pack_params(params):
    H = HIDDEN
    scale = 1.0 / math.sqrt(HEAD_DIM)

    def pad3h(v):
        return jnp.pad(v, (0, 3 * H - v.shape[0]))

    # attention scale folded into Wq / bq (saves a (BS,BS) mul per head/layer)
    wqkvo = jnp.stack([jnp.concatenate(
        [lp["wq"] * scale, lp["wk"], lp["wv"], lp["wo"]], axis=1)
        for lp in params["layers"]])                           # (L, H, 4H)
    w1 = jnp.stack([lp["w1"] for lp in params["layers"]])      # (L, H, I)
    w2 = jnp.stack([lp["w2"] for lp in params["layers"]])      # (L, I, H)
    vecs = jnp.stack([jnp.stack([
        jnp.concatenate([lp["bq"] * scale, lp["bk"], lp["bv"]]),  # row 0: bqkv (3H)
        pad3h(lp["bo"]),                                       # row 1
        pad3h(lp["attn_ln_g"]),                                # row 2
        pad3h(lp["attn_ln_b"]),                                # row 3
        pad3h(lp["b1"]),                                       # row 4 (I wide)
        pad3h(lp["b2"]),                                       # row 5
        pad3h(lp["out_ln_g"]),                                 # row 6
        pad3h(lp["out_ln_b"]),                                 # row 7
    ]) for lp in params["layers"]])                            # (L, 8, 3H)
    embln = jnp.stack([params["emb_ln_g"], params["emb_ln_b"]])  # (2, H)
    return embln, wqkvo, w1, w2, vecs


# --------------------------------- forward -------------------------------------
@jax.jit
def unmt_encoder_forward(params, input_ids, attention_mask):
    """Returns last_hidden_state, shape (B, S, HIDDEN)."""
    B, S = input_ids.shape
    BS = B * S

    # --- embeddings (gathers stay in XLA; their sum feeds the fused kernel) ---
    not_pad = (input_ids != PAD_IDX).astype(jnp.int32)
    # XLM-R position ids: cumsum over non-pad tokens, offset by padding_idx
    position_ids = jnp.cumsum(not_pad, axis=1) * not_pad + PAD_IDX
    emb = (jnp.take(params["word_emb"], input_ids, axis=0)
           + jnp.take(params["pos_emb"], position_ids, axis=0)
           + params["type_emb"][0])
    x_in = emb.reshape(BS, HIDDEN).astype(jnp.float32)

    # --- additive attention bias over the flattened token axis ---
    # block-diagonal (no cross-sequence attention) AND key-padding mask;
    # equivalent to HF's per-sequence (1 - mask) * NEG broadcast over queries.
    seq_ids = jnp.repeat(jnp.arange(B), S)                       # (BS,)
    same_seq = seq_ids[:, None] == seq_ids[None, :]              # (BS, BS)
    key_ok = attention_mask.reshape(BS).astype(bool)             # (BS,)
    bias = jnp.where(same_seq & key_ok[None, :], 0.0, MASK_NEG).astype(jnp.float32)

    embln, wqkvo, w1, w2, vecs = _pack_params(params)

    out = pl.pallas_call(
        encoder_kernel,
        out_shape=jax.ShapeDtypeStruct((BS, HIDDEN), jnp.float32),
        # no grid: one VMEM-resident block holds the whole batch and all weights
    )(x_in, bias, embln, wqkvo, w1, w2, vecs)
    return out.reshape(B, S, HIDDEN)


# ------------------------- pure-JAX reference (for check) ----------------------
def reference_forward(params, input_ids, attention_mask):
    B, S = input_ids.shape
    not_pad = (input_ids != PAD_IDX).astype(jnp.int32)
    position_ids = jnp.cumsum(not_pad, axis=1) * not_pad + PAD_IDX
    x = (jnp.take(params["word_emb"], input_ids, axis=0)
         + jnp.take(params["pos_emb"], position_ids, axis=0)
         + params["type_emb"][0]).astype(jnp.float32)

    def ln(x, g, b):
        mu = x.mean(-1, keepdims=True)
        var = ((x - mu) ** 2).mean(-1, keepdims=True)
        return (x - mu) / jnp.sqrt(var + LN_EPS) * g + b

    x = ln(x, params["emb_ln_g"], params["emb_ln_b"])
    mbias = (1.0 - attention_mask.astype(jnp.float32))[:, None, None, :] * MASK_NEG

    for lp in params["layers"]:
        q = (x @ lp["wq"] + lp["bq"]).reshape(B, S, N_HEADS, HEAD_DIM)
        k = (x @ lp["wk"] + lp["bk"]).reshape(B, S, N_HEADS, HEAD_DIM)
        v = (x @ lp["wv"] + lp["bv"]).reshape(B, S, N_HEADS, HEAD_DIM)
        s = jnp.einsum('bqhd,bkhd->bhqk', q, k) / math.sqrt(HEAD_DIM) + mbias
        p = jax.nn.softmax(s, axis=-1)
        ctx = jnp.einsum('bhqk,bkhd->bqhd', p, v).reshape(B, S, HIDDEN)
        attn = ctx @ lp["wo"] + lp["bo"]
        x = ln(x + attn, lp["attn_ln_g"], lp["attn_ln_b"])
        hmid = jax.nn.gelu(x @ lp["w1"] + lp["b1"], approximate=False)
        x = ln(x + (hmid @ lp["w2"] + lp["b2"]), lp["out_ln_g"], lp["out_ln_b"])
    return x


# ----------------------------------- main ---------------------------------------
if __name__ == "__main__":
    key = jax.random.PRNGKey(0)
    pkey, dkey = jax.random.split(key)
    params = init_params(pkey)

    B, S = 2, 8
    input_ids = jax.random.randint(dkey, (B, S), 2, VOCAB, dtype=jnp.int32)
    # pad the tail of the second sequence (pad token = 1)
    input_ids = input_ids.at[1, 5:].set(PAD_IDX)
    attention_mask = (input_ids != PAD_IDX).astype(jnp.int32)

    out = unmt_encoder_forward(params, input_ids, attention_mask)
    out = jax.block_until_ready(out)
    assert out.shape == (B, S, HIDDEN) and out.dtype == jnp.float32
    assert bool(jnp.all(jnp.isfinite(out)))

    ref = reference_forward(params, input_ids, attention_mask)
    assert bool(jnp.allclose(out, ref, atol=2e-2, rtol=2e-2))

    print("KERNEL_OK")
</pallas_src>

<mosaic_0001>
module attributes {stable_mosaic.version = 11 : i64} {
  func.func @encoder_kernel(%arg0: memref<16x32xf32, #tpu.memory_space<vmem>>, %arg1: memref<16x16xf32, #tpu.memory_space<vmem>>, %arg2: memref<2x32xf32, #tpu.memory_space<vmem>>, %arg3: memref<2x32x128xf32, #tpu.memory_space<vmem>>, %arg4: memref<2x32x64xf32, #tpu.memory_space<vmem>>, %arg5: memref<2x64x32xf32, #tpu.memory_space<vmem>>, %arg6: memref<2x8x96xf32, #tpu.memory_space<vmem>>, %arg7: memref<16x32xf32, #tpu.memory_space<vmem>>) attributes {dimension_semantics = [], scalar_prefetch = 0 : i64, scratch_operands = 0 : i64, tpu.core_type = #tpu.core_type<tc>} {
    %c0 = arith.constant 0 : index
    %c0_0 = arith.constant 0 : index
    %0 = vector.load %arg0[%c0, %c0_0] : memref<16x32xf32, #tpu.memory_space<vmem>>, vector<16x32xf32>
    %c0_1 = arith.constant 0 : index
    %c0_2 = arith.constant 0 : index
    %1 = vector.load %arg2[%c0_1, %c0_2] : memref<2x32xf32, #tpu.memory_space<vmem>>, vector<1x32xf32>
    %2 = vector.shape_cast %1 : vector<1x32xf32> to vector<32xf32>
    %c1 = arith.constant 1 : index
    %c0_3 = arith.constant 0 : index
    %3 = vector.load %arg2[%c1, %c0_3] : memref<2x32xf32, #tpu.memory_space<vmem>>, vector<1x32xf32>
    %4 = vector.shape_cast %3 : vector<1x32xf32> to vector<32xf32>
    %cst = arith.constant dense<0.000000e+00> : vector<16xf32>
    %5 = vector.multi_reduction <add>, %0, %cst [1] : vector<16x32xf32> to vector<16xf32>
    %6 = vector.shape_cast %5 : vector<16xf32> to vector<16x1xf32>
    %cst_4 = arith.constant 3.200000e+01 : f32
    %7 = vector.broadcast %cst_4 : f32 to vector<16x1xf32>
    %8 = arith.divf %6, %7 : vector<16x1xf32>
    %9 = vector.broadcast %8 : vector<16x1xf32> to vector<16x32xf32>
    %10 = arith.subf %0, %9 : vector<16x32xf32>
    %11 = arith.mulf %10, %10 : vector<16x32xf32>
    %cst_5 = arith.constant dense<0.000000e+00> : vector<16xf32>
    %12 = vector.multi_reduction <add>, %11, %cst_5 [1] : vector<16x32xf32> to vector<16xf32>
    %13 = vector.shape_cast %12 : vector<16xf32> to vector<16x1xf32>
    %cst_6 = arith.constant 3.200000e+01 : f32
    %14 = vector.broadcast %cst_6 : f32 to vector<16x1xf32>
    %15 = arith.divf %13, %14 : vector<16x1xf32>
    %16 = vector.broadcast %8 : vector<16x1xf32> to vector<16x32xf32>
    %17 = arith.subf %0, %16 : vector<16x32xf32>
    %cst_7 = arith.constant 9.99999974E-6 : f32
    %18 = vector.broadcast %cst_7 : f32 to vector<16x1xf32>
    %19 = arith.addf %15, %18 : vector<16x1xf32>
    %20 = math.rsqrt %19 : vector<16x1xf32>
    %21 = vector.broadcast %20 : vector<16x1xf32> to vector<16x32xf32>
    %22 = arith.mulf %17, %21 : vector<16x32xf32>
    %23 = vector.shape_cast %2 : vector<32xf32> to vector<1x32xf32>
    %24 = vector.broadcast %23 : vector<1x32xf32> to vector<16x32xf32>
    %25 = arith.mulf %22, %24 : vector<16x32xf32>
    %26 = vector.shape_cast %4 : vector<32xf32> to vector<1x32xf32>
    %27 = vector.broadcast %26 : vector<1x32xf32> to vector<16x32xf32>
    %28 = arith.addf %25, %27 : vector<16x32xf32>
    %c0_8 = arith.constant 0 : index
    %c0_9 = arith.constant 0 : index
    %29 = vector.load %arg1[%c0_8, %c0_9] : memref<16x16xf32, #tpu.memory_space<vmem>>, vector<16x16xf32>
    %c0_10 = arith.constant 0 : index
    %c0_11 = arith.constant 0 : index
    %c0_12 = arith.constant 0 : index
    %30 = vector.load %arg3[%c0_10, %c0_11, %c0_12] : memref<2x32x128xf32, #tpu.memory_space<vmem>>, vector<1x32x128xf32>
    %31 = vector.shape_cast %30 : vector<1x32x128xf32> to vector<32x128xf32>
    %c0_13 = arith.constant 0 : index
    %c0_14 = arith.constant 0 : index
    %c0_15 = arith.constant 0 : index
    %32 = vector.load %arg6[%c0_13, %c0_14, %c0_15] : memref<2x8x96xf32, #tpu.memory_space<vmem>>, vector<1x8x96xf32>
    %33 = vector.shape_cast %32 : vector<1x8x96xf32> to vector<8x96xf32>
    %cst_16 = arith.constant dense<0.000000e+00> : vector<16x128xf32>
    %34 = tpu.matmul %28, %31, %cst_16 {dimension_numbers = #tpu.dot_dimension_numbers<[1], [0], [0], [1], [0, 0, 1, 1], [], []>} : vector<16x32xf32>, vector<32x128xf32>, vector<16x128xf32> -> vector<16x128xf32>
    %35 = vector.extract_strided_slice %34 {offsets = [0, 0], sizes = [16, 96], strides = [1, 1]} : vector<16x128xf32> to vector<16x96xf32>
    %36 = vector.extract_strided_slice %33 {offsets = [0, 0], sizes = [1, 96], strides = [1, 1]} : vector<8x96xf32> to vector<1x96xf32>
    %37 = vector.shape_cast %36 : vector<1x96xf32> to vector<96xf32>
    %38 = vector.shape_cast %37 : vector<96xf32> to vector<1x96xf32>
    %39 = vector.broadcast %38 : vector<1x96xf32> to vector<16x96xf32>
    %40 = arith.addf %35, %39 : vector<16x96xf32>
    %41 = vector.extract_strided_slice %40 {offsets = [0, 0], sizes = [16, 32], strides = [1, 1]} : vector<16x96xf32> to vector<16x32xf32>
    %42 = vector.extract_strided_slice %40 {offsets = [0, 32], sizes = [16, 32], strides = [1, 1]} : vector<16x96xf32> to vector<16x32xf32>
    %43 = vector.extract_strided_slice %40 {offsets = [0, 64], sizes = [16, 32], strides = [1, 1]} : vector<16x96xf32> to vector<16x32xf32>
    %44 = vector.extract_strided_slice %41 {offsets = [0, 0], sizes = [16, 8], strides = [1, 1]} : vector<16x32xf32> to vector<16x8xf32>
    %45 = vector.extract_strided_slice %42 {offsets = [0, 0], sizes = [16, 8], strides = [1, 1]} : vector<16x32xf32> to vector<16x8xf32>
    %46 = tpu.transpose %45, [1, 0] : vector<16x8xf32> -> vector<8x16xf32>
    %cst_17 = arith.constant dense<0.000000e+00> : vector<16x16xf32>
    %47 = tpu.matmul %44, %46, %cst_17 {dimension_numbers = #tpu.dot_dimension_numbers<[1], [0], [0], [1], [0, 0, 1, 1], [], []>} : vector<16x8xf32>, vector<8x16xf32>, vector<16x16xf32> -> vector<16x16xf32>
    %48 = arith.addf %47, %29 : vector<16x16xf32>
    %cst_18 = arith.constant dense<0xFF800000> : vector<16xf32>
    %49 = vector.multi_reduction <maximumf>, %48, %cst_18 [1] : vector<16x16xf32> to vector<16xf32>
    %50 = vector.shape_cast %49 : vector<16xf32> to vector<16x1xf32>
    %51 = vector.broadcast %50 : vector<16x1xf32> to vector<16x16xf32>
    %52 = arith.subf %48, %51 : vector<16x16xf32>
    %53 = math.exp %52 : vector<16x16xf32>
    %cst_19 = arith.constant dense<0.000000e+00> : vector<16xf32>
    %54 = vector.multi_reduction <add>, %53, %cst_19 [1] : vector<16x16xf32> to vector<16xf32>
    %55 = vector.shape_cast %54 : vector<16xf32> to vector<16x1xf32>
    %56 = tpu.reciprocal %55 {approx = true} : vector<16x1xf32> -> vector<16x1xf32>
    %57 = vector.broadcast %56 : vector<16x1xf32> to vector<16x16xf32>
    %58 = arith.mulf %53, %57 : vector<16x16xf32>
    %59 = vector.extract_strided_slice %43 {offsets = [0, 0], sizes = [16, 8], strides = [1, 1]} : vector<16x32xf32> to vector<16x8xf32>
    %cst_20 = arith.constant dense<0.000000e+00> : vector<16x8xf32>
    %60 = tpu.matmul %58, %59, %cst_20 {dimension_numbers = #tpu.dot_dimension_numbers<[1], [0], [0], [1], [0, 0, 1, 1], [], []>} : vector<16x16xf32>, vector<16x8xf32>, vector<16x8xf32> -> vector<16x8xf32>
    %61 = vector.extract_strided_slice %41 {offsets = [0, 8], sizes = [16, 8], strides = [1, 1]} : vector<16x32xf32> to vector<16x8xf32>
    %62 = vector.extract_strided_slice %42 {offsets = [0, 8], sizes = [16, 8], strides = [1, 1]} : vector<16x32xf32> to vector<16x8xf32>
    %63 = tpu.transpose %62, [1, 0] : vector<16x8xf32> -> vector<8x16xf32>
    %cst_21 = arith.constant dense<0.000000e+00> : vector<16x16xf32>
    %64 = tpu.matmul %61, %63, %cst_21 {dimension_numbers = #tpu.dot_dimension_numbers<[1], [0], [0], [1], [0, 0, 1, 1], [], []>} : vector<16x8xf32>, vector<8x16xf32>, vector<16x16xf32> -> vector<16x16xf32>
    %65 = arith.addf %64, %29 : vector<16x16xf32>
    %cst_22 = arith.constant dense<0xFF800000> : vector<16xf32>
    %66 = vector.multi_reduction <maximumf>, %65, %cst_22 [1] : vector<16x16xf32> to vector<16xf32>
    %67 = vector.shape_cast %66 : vector<16xf32> to vector<16x1xf32>
    %68 = vector.broadcast %67 : vector<16x1xf32> to vector<16x16xf32>
    %69 = arith.subf %65, %68 : vector<16x16xf32>
    %70 = math.exp %69 : vector<16x16xf32>
    %cst_23 = arith.constant dense<0.000000e+00> : vector<16xf32>
    %71 = vector.multi_reduction <add>, %70, %cst_23 [1] : vector<16x16xf32> to vector<16xf32>
    %72 = vector.shape_cast %71 : vector<16xf32> to vector<16x1xf32>
    %73 = tpu.reciprocal %72 {approx = true} : vector<16x1xf32> -> vector<16x1xf32>
    %74 = vector.broadcast %73 : vector<16x1xf32> to vector<16x16xf32>
    %75 = arith.mulf %70, %74 : vector<16x16xf32>
    %76 = vector.extract_strided_slice %43 {offsets = [0, 8], sizes = [16, 8], strides = [1, 1]} : vector<16x32xf32> to vector<16x8xf32>
    %cst_24 = arith.constant dense<0.000000e+00> : vector<16x8xf32>
    %77 = tpu.matmul %75, %76, %cst_24 {dimension_numbers = #tpu.dot_dimension_numbers<[1], [0], [0], [1], [0, 0, 1, 1], [], []>} : vector<16x16xf32>, vector<16x8xf32>, vector<16x8xf32> -> vector<16x8xf32>
    %78 = vector.extract_strided_slice %41 {offsets = [0, 16], sizes = [16, 8], strides = [1, 1]} : vector<16x32xf32> to vector<16x8xf32>
    %79 = vector.extract_strided_slice %42 {offsets = [0, 16], sizes = [16, 8], strides = [1, 1]} : vector<16x32xf32> to vector<16x8xf32>
    %80 = tpu.transpose %79, [1, 0] : vector<16x8xf32> -> vector<8x16xf32>
    %cst_25 = arith.constant dense<0.000000e+00> : vector<16x16xf32>
    %81 = tpu.matmul %78, %80, %cst_25 {dimension_numbers = #tpu.dot_dimension_numbers<[1], [0], [0], [1], [0, 0, 1, 1], [], []>} : vector<16x8xf32>, vector<8x16xf32>, vector<16x16xf32> -> vector<16x16xf32>
    %82 = arith.addf %81, %29 : vector<16x16xf32>
    %cst_26 = arith.constant dense<0xFF800000> : vector<16xf32>
    %83 = vector.multi_reduction <maximumf>, %82, %cst_26 [1] : vector<16x16xf32> to vector<16xf32>
    %84 = vector.shape_cast %83 : vector<16xf32> to vector<16x1xf32>
    %85 = vector.broadcast %84 : vector<16x1xf32> to vector<16x16xf32>
    %86 = arith.subf %82, %85 : vector<16x16xf32>
    %87 = math.exp %86 : vector<16x16xf32>
    %cst_27 = arith.constant dense<0.000000e+00> : vector<16xf32>
    %88 = vector.multi_reduction <add>, %87, %cst_27 [1] : vector<16x16xf32> to vector<16xf32>
    %89 = vector.shape_cast %88 : vector<16xf32> to vector<16x1xf32>
    %90 = tpu.reciprocal %89 {approx = true} : vector<16x1xf32> -> vector<16x1xf32>
    %91 = vector.broadcast %90 : vector<16x1xf32> to vector<16x16xf32>
    %92 = arith.mulf %87, %91 : vector<16x16xf32>
    %93 = vector.extract_strided_slice %43 {offsets = [0, 16], sizes = [16, 8], strides = [1, 1]} : vector<16x32xf32> to vector<16x8xf32>
    %cst_28 = arith.constant dense<0.000000e+00> : vector<16x8xf32>
    %94 = tpu.matmul %92, %93, %cst_28 {dimension_numbers = #tpu.dot_dimension_numbers<[1], [0], [0], [1], [0, 0, 1, 1], [], []>} : vector<16x16xf32>, vector<16x8xf32>, vector<16x8xf32> -> vector<16x8xf32>
    %95 = vector.extract_strided_slice %41 {offsets = [0, 24], sizes = [16, 8], strides = [1, 1]} : vector<16x32xf32> to vector<16x8xf32>
    %96 = vector.extract_strided_slice %42 {offsets = [0, 24], sizes = [16, 8], strides = [1, 1]} : vector<16x32xf32> to vector<16x8xf32>
    %97 = tpu.transpose %96, [1, 0] : vector<16x8xf32> -> vector<8x16xf32>
    %cst_29 = arith.constant dense<0.000000e+00> : vector<16x16xf32>
    %98 = tpu.matmul %95, %97, %cst_29 {dimension_numbers = #tpu.dot_dimension_numbers<[1], [0], [0], [1], [0, 0, 1, 1], [], []>} : vector<16x8xf32>, vector<8x16xf32>, vector<16x16xf32> -> vector<16x16xf32>
    %99 = arith.addf %98, %29 : vector<16x16xf32>
    %cst_30 = arith.constant dense<0xFF800000> : vector<16xf32>
    %100 = vector.multi_reduction <maximumf>, %99, %cst_30 [1] : vector<16x16xf32> to vector<16xf32>
    %101 = vector.shape_cast %100 : vector<16xf32> to vector<16x1xf32>
    %102 = vector.broadcast %101 : vector<16x1xf32> to vector<16x16xf32>
    %103 = arith.subf %99, %102 : vector<16x16xf32>
    %104 = math.exp %103 : vector<16x16xf32>
    %cst_31 = arith.constant dense<0.000000e+00> : vector<16xf32>
    %105 = vector.multi_reduction <add>, %104, %cst_31 [1] : vector<16x16xf32> to vector<16xf32>
    %106 = vector.shape_cast %105 : vector<16xf32> to vector<16x1xf32>
    %107 = tpu.reciprocal %106 {approx = true} : vector<16x1xf32> -> vector<16x1xf32>
    %108 = vector.broadcast %107 : vector<16x1xf32> to vector<16x16xf32>
    %109 = arith.mulf %104, %108 : vector<16x16xf32>
    %110 = vector.extract_strided_slice %43 {offsets = [0, 24], sizes = [16, 8], strides = [1, 1]} : vector<16x32xf32> to vector<16x8xf32>
    %cst_32 = arith.constant dense<0.000000e+00> : vector<16x8xf32>
    %111 = tpu.matmul %109, %110, %cst_32 {dimension_numbers = #tpu.dot_dimension_numbers<[1], [0], [0], [1], [0, 0, 1, 1], [], []>} : vector<16x16xf32>, vector<16x8xf32>, vector<16x8xf32> -> vector<16x8xf32>
    %112 = tpu.concatenate %60, %77, %94, %111 in 1 : vector<16x8xf32>, vector<16x8xf32>, vector<16x8xf32>, vector<16x8xf32> -> vector<16x32xf32>
    %113 = vector.extract_strided_slice %31 {offsets = [0, 96], sizes = [32, 32], strides = [1, 1]} : vector<32x128xf32> to vector<32x32xf32>
    %cst_33 = arith.constant dense<0.000000e+00> : vector<16x32xf32>
    %114 = tpu.matmul %112, %113, %cst_33 {dimension_numbers = #tpu.dot_dimension_numbers<[1], [0], [0], [1], [0, 0, 1, 1], [], []>} : vector<16x32xf32>, vector<32x32xf32>, vector<16x32xf32> -> vector<16x32xf32>
    %115 = vector.extract_strided_slice %33 {offsets = [1, 0], sizes = [1, 32], strides = [1, 1]} : vector<8x96xf32> to vector<1x32xf32>
    %116 = vector.shape_cast %115 : vector<1x32xf32> to vector<32xf32>
    %117 = vector.shape_cast %116 : vector<32xf32> to vector<1x32xf32>
    %118 = vector.broadcast %117 : vector<1x32xf32> to vector<16x32xf32>
    %119 = arith.addf %114, %118 : vector<16x32xf32>
    %120 = arith.addf %28, %119 : vector<16x32xf32>
    %121 = vector.extract_strided_slice %33 {offsets = [2, 0], sizes = [1, 32], strides = [1, 1]} : vector<8x96xf32> to vector<1x32xf32>
    %122 = vector.shape_cast %121 : vector<1x32xf32> to vector<32xf32>
    %123 = vector.extract_strided_slice %33 {offsets = [3, 0], sizes = [1, 32], strides = [1, 1]} : vector<8x96xf32> to vector<1x32xf32>
    %124 = vector.shape_cast %123 : vector<1x32xf32> to vector<32xf32>
    %cst_34 = arith.constant dense<0.000000e+00> : vector<16xf32>
    %125 = vector.multi_reduction <add>, %120, %cst_34 [1] : vector<16x32xf32> to vector<16xf32>
    %126 = vector.shape_cast %125 : vector<16xf32> to vector<16x1xf32>
    %cst_35 = arith.constant 3.200000e+01 : f32
    %127 = vector.broadcast %cst_35 : f32 to vector<16x1xf32>
    %128 = arith.divf %126, %127 : vector<16x1xf32>
    %129 = vector.broadcast %128 : vector<16x1xf32> to vector<16x32xf32>
    %130 = arith.subf %120, %129 : vector<16x32xf32>
    %131 = arith.mulf %130, %130 : vector<16x32xf32>
    %cst_36 = arith.constant dense<0.000000e+00> : vector<16xf32>
    %132 = vector.multi_reduction <add>, %131, %cst_36 [1] : vector<16x32xf32> to vector<16xf32>
    %133 = vector.shape_cast %132 : vector<16xf32> to vector<16x1xf32>
    %cst_37 = arith.constant 3.200000e+01 : f32
    %134 = vector.broadcast %cst_37 : f32 to vector<16x1xf32>
    %135 = arith.divf %133, %134 : vector<16x1xf32>
    %136 = vector.broadcast %128 : vector<16x1xf32> to vector<16x32xf32>
    %137 = arith.subf %120, %136 : vector<16x32xf32>
    %cst_38 = arith.constant 9.99999974E-6 : f32
    %138 = vector.broadcast %cst_38 : f32 to vector<16x1xf32>
    %139 = arith.addf %135, %138 : vector<16x1xf32>
    %140 = math.rsqrt %139 : vector<16x1xf32>
    %141 = vector.broadcast %140 : vector<16x1xf32> to vector<16x32xf32>
    %142 = arith.mulf %137, %141 : vector<16x32xf32>
    %143 = vector.shape_cast %122 : vector<32xf32> to vector<1x32xf32>
    %144 = vector.broadcast %143 : vector<1x32xf32> to vector<16x32xf32>
    %145 = arith.mulf %142, %144 : vector<16x32xf32>
    %146 = vector.shape_cast %124 : vector<32xf32> to vector<1x32xf32>
    %147 = vector.broadcast %146 : vector<1x32xf32> to vector<16x32xf32>
    %148 = arith.addf %145, %147 : vector<16x32xf32>
    %c0_39 = arith.constant 0 : index
    %c0_40 = arith.constant 0 : index
    %c0_41 = arith.constant 0 : index
    %149 = vector.load %arg4[%c0_39, %c0_40, %c0_41] : memref<2x32x64xf32, #tpu.memory_space<vmem>>, vector<1x32x64xf32>
    %150 = vector.shape_cast %149 : vector<1x32x64xf32> to vector<32x64xf32>
    %cst_42 = arith.constant dense<0.000000e+00> : vector<16x64xf32>
    %151 = tpu.matmul %148, %150, %cst_42 {dimension_numbers = #tpu.dot_dimension_numbers<[1], [0], [0], [1], [0, 0, 1, 1], [], []>} : vector<16x32xf32>, vector<32x64xf32>, vector<16x64xf32> -> vector<16x64xf32>
    %152 = vector.extract_strided_slice %33 {offsets = [4, 0], sizes = [1, 64], strides = [1, 1]} : vector<8x96xf32> to vector<1x64xf32>
    %153 = vector.shape_cast %152 : vector<1x64xf32> to vector<64xf32>
    %154 = vector.shape_cast %153 : vector<64xf32> to vector<1x64xf32>
    %155 = vector.broadcast %154 : vector<1x64xf32> to vector<16x64xf32>
    %156 = arith.addf %151, %155 : vector<16x64xf32>
    %cst_43 = arith.constant 5.000000e-01 : f32
    %157 = vector.broadcast %cst_43 : f32 to vector<16x64xf32>
    %158 = arith.mulf %157, %156 : vector<16x64xf32>
    %cst_44 = arith.constant 0.707106769 : f32
    %159 = vector.broadcast %cst_44 : f32 to vector<16x64xf32>
    %160 = arith.mulf %156, %159 : vector<16x64xf32>
    %161 = math.erf %160 : vector<16x64xf32>
    %cst_45 = arith.constant 1.000000e+00 : f32
    %162 = vector.broadcast %cst_45 : f32 to vector<16x64xf32>
    %163 = arith.addf %162, %161 : vector<16x64xf32>
    %164 = arith.mulf %158, %163 : vector<16x64xf32>
    %c0_46 = arith.constant 0 : index
    %c0_47 = arith.constant 0 : index
    %c0_48 = arith.constant 0 : index
    %165 = vector.load %arg5[%c0_46, %c0_47, %c0_48] : memref<2x64x32xf32, #tpu.memory_space<vmem>>, vector<1x64x32xf32>
    %166 = vector.shape_cast %165 : vector<1x64x32xf32> to vector<64x32xf32>
    %cst_49 = arith.constant dense<0.000000e+00> : vector<16x32xf32>
    %167 = tpu.matmul %164, %166, %cst_49 {dimension_numbers = #tpu.dot_dimension_numbers<[1], [0], [0], [1], [0, 0, 1, 1], [], []>} : vector<16x64xf32>, vector<64x32xf32>, vector<16x32xf32> -> vector<16x32xf32>
    %168 = vector.extract_strided_slice %33 {offsets = [5, 0], sizes = [1, 32], strides = [1, 1]} : vector<8x96xf32> to vector<1x32xf32>
    %169 = vector.shape_cast %168 : vector<1x32xf32> to vector<32xf32>
    %170 = vector.shape_cast %169 : vector<32xf32> to vector<1x32xf32>
    %171 = vector.broadcast %170 : vector<1x32xf32> to vector<16x32xf32>
    %172 = arith.addf %167, %171 : vector<16x32xf32>
    %173 = arith.addf %148, %172 : vector<16x32xf32>
    %174 = vector.extract_strided_slice %33 {offsets = [6, 0], sizes = [1, 32], strides = [1, 1]} : vector<8x96xf32> to vector<1x32xf32>
    %175 = vector.shape_cast %174 : vector<1x32xf32> to vector<32xf32>
    %176 = vector.extract_strided_slice %33 {offsets = [7, 0], sizes = [1, 32], strides = [1, 1]} : vector<8x96xf32> to vector<1x32xf32>
    %177 = vector.shape_cast %176 : vector<1x32xf32> to vector<32xf32>
    %cst_50 = arith.constant dense<0.000000e+00> : vector<16xf32>
    %178 = vector.multi_reduction <add>, %173, %cst_50 [1] : vector<16x32xf32> to vector<16xf32>
    %179 = vector.shape_cast %178 : vector<16xf32> to vector<16x1xf32>
    %cst_51 = arith.constant 3.200000e+01 : f32
    %180 = vector.broadcast %cst_51 : f32 to vector<16x1xf32>
    %181 = arith.divf %179, %180 : vector<16x1xf32>
    %182 = vector.broadcast %181 : vector<16x1xf32> to vector<16x32xf32>
    %183 = arith.subf %173, %182 : vector<16x32xf32>
    %184 = arith.mulf %183, %183 : vector<16x32xf32>
    %cst_52 = arith.constant dense<0.000000e+00> : vector<16xf32>
    %185 = vector.multi_reduction <add>, %184, %cst_52 [1] : vector<16x32xf32> to vector<16xf32>
    %186 = vector.shape_cast %185 : vector<16xf32> to vector<16x1xf32>
    %cst_53 = arith.constant 3.200000e+01 : f32
    %187 = vector.broadcast %cst_53 : f32 to vector<16x1xf32>
    %188 = arith.divf %186, %187 : vector<16x1xf32>
    %189 = vector.broadcast %181 : vector<16x1xf32> to vector<16x32xf32>
    %190 = arith.subf %173, %189 : vector<16x32xf32>
    %cst_54 = arith.constant 9.99999974E-6 : f32
    %191 = vector.broadcast %cst_54 : f32 to vector<16x1xf32>
    %192 = arith.addf %188, %191 : vector<16x1xf32>
    %193 = math.rsqrt %192 : vector<16x1xf32>
    %194 = vector.broadcast %193 : vector<16x1xf32> to vector<16x32xf32>
    %195 = arith.mulf %190, %194 : vector<16x32xf32>
    %196 = vector.shape_cast %175 : vector<32xf32> to vector<1x32xf32>
    %197 = vector.broadcast %196 : vector<1x32xf32> to vector<16x32xf32>
    %198 = arith.mulf %195, %197 : vector<16x32xf32>
    %199 = vector.shape_cast %177 : vector<32xf32> to vector<1x32xf32>
    %200 = vector.broadcast %199 : vector<1x32xf32> to vector<16x32xf32>
    %201 = arith.addf %198, %200 : vector<16x32xf32>
    %c1_55 = arith.constant 1 : index
    %c0_56 = arith.constant 0 : index
    %c0_57 = arith.constant 0 : index
    %202 = vector.load %arg3[%c1_55, %c0_56, %c0_57] : memref<2x32x128xf32, #tpu.memory_space<vmem>>, vector<1x32x128xf32>
    %203 = vector.shape_cast %202 : vector<1x32x128xf32> to vector<32x128xf32>
    %c1_58 = arith.constant 1 : index
    %c0_59 = arith.constant 0 : index
    %c0_60 = arith.constant 0 : index
    %204 = vector.load %arg6[%c1_58, %c0_59, %c0_60] : memref<2x8x96xf32, #tpu.memory_space<vmem>>, vector<1x8x96xf32>
    %205 = vector.shape_cast %204 : vector<1x8x96xf32> to vector<8x96xf32>
    %cst_61 = arith.constant dense<0.000000e+00> : vector<16x128xf32>
    %206 = tpu.matmul %201, %203, %cst_61 {dimension_numbers = #tpu.dot_dimension_numbers<[1], [0], [0], [1], [0, 0, 1, 1], [], []>} : vector<16x32xf32>, vector<32x128xf32>, vector<16x128xf32> -> vector<16x128xf32>
    %207 = vector.extract_strided_slice %206 {offsets = [0, 0], sizes = [16, 96], strides = [1, 1]} : vector<16x128xf32> to vector<16x96xf32>
    %208 = vector.extract_strided_slice %205 {offsets = [0, 0], sizes = [1, 96], strides = [1, 1]} : vector<8x96xf32> to vector<1x96xf32>
    %209 = vector.shape_cast %208 : vector<1x96xf32> to vector<96xf32>
    %210 = vector.shape_cast %209 : vector<96xf32> to vector<1x96xf32>
    %211 = vector.broadcast %210 : vector<1x96xf32> to vector<16x96xf32>
    %212 = arith.addf %207, %211 : vector<16x96xf32>
    %213 = vector.extract_strided_slice %212 {offsets = [0, 0], sizes = [16, 32], strides = [1, 1]} : vector<16x96xf32> to vector<16x32xf32>
    %214 = vector.extract_strided_slice %212 {offsets = [0, 32], sizes = [16, 32], strides = [1, 1]} : vector<16x96xf32> to vector<16x32xf32>
    %215 = vector.extract_strided_slice %212 {offsets = [0, 64], sizes = [16, 32], strides = [1, 1]} : vector<16x96xf32> to vector<16x32xf32>
    %216 = vector.extract_strided_slice %213 {offsets = [0, 0], sizes = [16, 8], strides = [1, 1]} : vector<16x32xf32> to vector<16x8xf32>
    %217 = vector.extract_strided_slice %214 {offsets = [0, 0], sizes = [16, 8], strides = [1, 1]} : vector<16x32xf32> to vector<16x8xf32>
    %218 = tpu.transpose %217, [1, 0] : vector<16x8xf32> -> vector<8x16xf32>
    %cst_62 = arith.constant dense<0.000000e+00> : vector<16x16xf32>
    %219 = tpu.matmul %216, %218, %cst_62 {dimension_numbers = #tpu.dot_dimension_numbers<[1], [0], [0], [1], [0, 0, 1, 1], [], []>} : vector<16x8xf32>, vector<8x16xf32>, vector<16x16xf32> -> vector<16x16xf32>
    %220 = arith.addf %219, %29 : vector<16x16xf32>
    %cst_63 = arith.constant dense<0xFF800000> : vector<16xf32>
    %221 = vector.multi_reduction <maximumf>, %220, %cst_63 [1] : vector<16x16xf32> to vector<16xf32>
    %222 = vector.shape_cast %221 : vector<16xf32> to vector<16x1xf32>
    %223 = vector.broadcast %222 : vector<16x1xf32> to vector<16x16xf32>
    %224 = arith.subf %220, %223 : vector<16x16xf32>
    %225 = math.exp %224 : vector<16x16xf32>
    %cst_64 = arith.constant dense<0.000000e+00> : vector<16xf32>
    %226 = vector.multi_reduction <add>, %225, %cst_64 [1] : vector<16x16xf32> to vector<16xf32>
    %227 = vector.shape_cast %226 : vector<16xf32> to vector<16x1xf32>
    %228 = tpu.reciprocal %227 {approx = true} : vector<16x1xf32> -> vector<16x1xf32>
    %229 = vector.broadcast %228 : vector<16x1xf32> to vector<16x16xf32>
    %230 = arith.mulf %225, %229 : vector<16x16xf32>
    %231 = vector.extract_strided_slice %215 {offsets = [0, 0], sizes = [16, 8], strides = [1, 1]} : vector<16x32xf32> to vector<16x8xf32>
    %cst_65 = arith.constant dense<0.000000e+00> : vector<16x8xf32>
    %232 = tpu.matmul %230, %231, %cst_65 {dimension_numbers = #tpu.dot_dimension_numbers<[1], [0], [0], [1], [0, 0, 1, 1], [], []>} : vector<16x16xf32>, vector<16x8xf32>, vector<16x8xf32> -> vector<16x8xf32>
    %233 = vector.extract_strided_slice %213 {offsets = [0, 8], sizes = [16, 8], strides = [1, 1]} : vector<16x32xf32> to vector<16x8xf32>
    %234 = vector.extract_strided_slice %214 {offsets = [0, 8], sizes = [16, 8], strides = [1, 1]} : vector<16x32xf32> to vector<16x8xf32>
    %235 = tpu.transpose %234, [1, 0] : vector<16x8xf32> -> vector<8x16xf32>
    %cst_66 = arith.constant dense<0.000000e+00> : vector<16x16xf32>
    %236 = tpu.matmul %233, %235, %cst_66 {dimension_numbers = #tpu.dot_dimension_numbers<[1], [0], [0], [1], [0, 0, 1, 1], [], []>} : vector<16x8xf32>, vector<8x16xf32>, vector<16x16xf32> -> vector<16x16xf32>
    %237 = arith.addf %236, %29 : vector<16x16xf32>
    %cst_67 = arith.constant dense<0xFF800000> : vector<16xf32>
    %238 = vector.multi_reduction <maximumf>, %237, %cst_67 [1] : vector<16x16xf32> to vector<16xf32>
    %239 = vector.shape_cast %238 : vector<16xf32> to vector<16x1xf32>
    %240 = vector.broadcast %239 : vector<16x1xf32> to vector<16x16xf32>
    %241 = arith.subf %237, %240 : vector<16x16xf32>
    %242 = math.exp %241 : vector<16x16xf32>
    %cst_68 = arith.constant dense<0.000000e+00> : vector<16xf32>
    %243 = vector.multi_reduction <add>, %242, %cst_68 [1] : vector<16x16xf32> to vector<16xf32>
    %244 = vector.shape_cast %243 : vector<16xf32> to vector<16x1xf32>
    %245 = tpu.reciprocal %244 {approx = true} : vector<16x1xf32> -> vector<16x1xf32>
    %246 = vector.broadcast %245 : vector<16x1xf32> to vector<16x16xf32>
    %247 = arith.mulf %242, %246 : vector<16x16xf32>
    %248 = vector.extract_strided_slice %215 {offsets = [0, 8], sizes = [16, 8], strides = [1, 1]} : vector<16x32xf32> to vector<16x8xf32>
    %cst_69 = arith.constant dense<0.000000e+00> : vector<16x8xf32>
    %249 = tpu.matmul %247, %248, %cst_69 {dimension_numbers = #tpu.dot_dimension_numbers<[1], [0], [0], [1], [0, 0, 1, 1], [], []>} : vector<16x16xf32>, vector<16x8xf32>, vector<16x8xf32> -> vector<16x8xf32>
    %250 = vector.extract_strided_slice %213 {offsets = [0, 16], sizes = [16, 8], strides = [1, 1]} : vector<16x32xf32> to vector<16x8xf32>
    %251 = vector.extract_strided_slice %214 {offsets = [0, 16], sizes = [16, 8], strides = [1, 1]} : vector<16x32xf32> to vector<16x8xf32>
    %252 = tpu.transpose %251, [1, 0] : vector<16x8xf32> -> vector<8x16xf32>
    %cst_70 = arith.constant dense<0.000000e+00> : vector<16x16xf32>
    %253 = tpu.matmul %250, %252, %cst_70 {dimension_numbers = #tpu.dot_dimension_numbers<[1], [0], [0], [1], [0, 0, 1, 1], [], []>} : vector<16x8xf32>, vector<8x16xf32>, vector<16x16xf32> -> vector<16x16xf32>
    %254 = arith.addf %253, %29 : vector<16x16xf32>
    %cst_71 = arith.constant dense<0xFF800000> : vector<16xf32>
    %255 = vector.multi_reduction <maximumf>, %254, %cst_71 [1] : vector<16x16xf32> to vector<16xf32>
    %256 = vector.shape_cast %255 : vector<16xf32> to vector<16x1xf32>
    %257 = vector.broadcast %256 : vector<16x1xf32> to vector<16x16xf32>
    %258 = arith.subf %254, %257 : vector<16x16xf32>
    %259 = math.exp %258 : vector<16x16xf32>
    %cst_72 = arith.constant dense<0.000000e+00> : vector<16xf32>
    %260 = vector.multi_reduction <add>, %259, %cst_72 [1] : vector<16x16xf32> to vector<16xf32>
    %261 = vector.shape_cast %260 : vector<16xf32> to vector<16x1xf32>
    %262 = tpu.reciprocal %261 {approx = true} : vector<16x1xf32> -> vector<16x1xf32>
    %263 = vector.broadcast %262 : vector<16x1xf32> to vector<16x16xf32>
    %264 = arith.mulf %259, %263 : vector<16x16xf32>
    %265 = vector.extract_strided_slice %215 {offsets = [0, 16], sizes = [16, 8], strides = [1, 1]} : vector<16x32xf32> to vector<16x8xf32>
    %cst_73 = arith.constant dense<0.000000e+00> : vector<16x8xf32>
    %266 = tpu.matmul %264, %265, %cst_73 {dimension_numbers = #tpu.dot_dimension_numbers<[1], [0], [0], [1], [0, 0, 1, 1], [], []>} : vector<16x16xf32>, vector<16x8xf32>, vector<16x8xf32> -> vector<16x8xf32>
    %267 = vector.extract_strided_slice %213 {offsets = [0, 24], sizes = [16, 8], strides = [1, 1]} : vector<16x32xf32> to vector<16x8xf32>
    %268 = vector.extract_strided_slice %214 {offsets = [0, 24], sizes = [16, 8], strides = [1, 1]} : vector<16x32xf32> to vector<16x8xf32>
    %269 = tpu.transpose %268, [1, 0] : vector<16x8xf32> -> vector<8x16xf32>
    %cst_74 = arith.constant dense<0.000000e+00> : vector<16x16xf32>
    %270 = tpu.matmul %267, %269, %cst_74 {dimension_numbers = #tpu.dot_dimension_numbers<[1], [0], [0], [1], [0, 0, 1, 1], [], []>} : vector<16x8xf32>, vector<8x16xf32>, vector<16x16xf32> -> vector<16x16xf32>
    %271 = arith.addf %270, %29 : vector<16x16xf32>
    %cst_75 = arith.constant dense<0xFF800000> : vector<16xf32>
    %272 = vector.multi_reduction <maximumf>, %271, %cst_75 [1] : vector<16x16xf32> to vector<16xf32>
    %273 = vector.shape_cast %272 : vector<16xf32> to vector<16x1xf32>
    %274 = vector.broadcast %273 : vector<16x1xf32> to vector<16x16xf32>
    %275 = arith.subf %271, %274 : vector<16x16xf32>
    %276 = math.exp %275 : vector<16x16xf32>
    %cst_76 = arith.constant dense<0.000000e+00> : vector<16xf32>
    %277 = vector.multi_reduction <add>, %276, %cst_76 [1] : vector<16x16xf32> to vector<16xf32>
    %278 = vector.shape_cast %277 : vector<16xf32> to vector<16x1xf32>
    %279 = tpu.reciprocal %278 {approx = true} : vector<16x1xf32> -> vector<16x1xf32>
    %280 = vector.broadcast %279 : vector<16x1xf32> to vector<16x16xf32>
    %281 = arith.mulf %276, %280 : vector<16x16xf32>
    %282 = vector.extract_strided_slice %215 {offsets = [0, 24], sizes = [16, 8], strides = [1, 1]} : vector<16x32xf32> to vector<16x8xf32>
    %cst_77 = arith.constant dense<0.000000e+00> : vector<16x8xf32>
    %283 = tpu.matmul %281, %282, %cst_77 {dimension_numbers = #tpu.dot_dimension_numbers<[1], [0], [0], [1], [0, 0, 1, 1], [], []>} : vector<16x16xf32>, vector<16x8xf32>, vector<16x8xf32> -> vector<16x8xf32>
    %284 = tpu.concatenate %232, %249, %266, %283 in 1 : vector<16x8xf32>, vector<16x8xf32>, vector<16x8xf32>, vector<16x8xf32> -> vector<16x32xf32>
    %285 = vector.extract_strided_slice %203 {offsets = [0, 96], sizes = [32, 32], strides = [1, 1]} : vector<32x128xf32> to vector<32x32xf32>
    %cst_78 = arith.constant dense<0.000000e+00> : vector<16x32xf32>
    %286 = tpu.matmul %284, %285, %cst_78 {dimension_numbers = #tpu.dot_dimension_numbers<[1], [0], [0], [1], [0, 0, 1, 1], [], []>} : vector<16x32xf32>, vector<32x32xf32>, vector<16x32xf32> -> vector<16x32xf32>
    %287 = vector.extract_strided_slice %205 {offsets = [1, 0], sizes = [1, 32], strides = [1, 1]} : vector<8x96xf32> to vector<1x32xf32>
    %288 = vector.shape_cast %287 : vector<1x32xf32> to vector<32xf32>
    %289 = vector.shape_cast %288 : vector<32xf32> to vector<1x32xf32>
    %290 = vector.broadcast %289 : vector<1x32xf32> to vector<16x32xf32>
    %291 = arith.addf %286, %290 : vector<16x32xf32>
    %292 = arith.addf %201, %291 : vector<16x32xf32>
    %293 = vector.extract_strided_slice %205 {offsets = [2, 0], sizes = [1, 32], strides = [1, 1]} : vector<8x96xf32> to vector<1x32xf32>
    %294 = vector.shape_cast %293 : vector<1x32xf32> to vector<32xf32>
    %295 = vector.extract_strided_slice %205 {offsets = [3, 0], sizes = [1, 32], strides = [1, 1]} : vector<8x96xf32> to vector<1x32xf32>
    %296 = vector.shape_cast %295 : vector<1x32xf32> to vector<32xf32>
    %cst_79 = arith.constant dense<0.000000e+00> : vector<16xf32>
    %297 = vector.multi_reduction <add>, %292, %cst_79 [1] : vector<16x32xf32> to vector<16xf32>
    %298 = vector.shape_cast %297 : vector<16xf32> to vector<16x1xf32>
    %cst_80 = arith.constant 3.200000e+01 : f32
    %299 = vector.broadcast %cst_80 : f32 to vector<16x1xf32>
    %300 = arith.divf %298, %299 : vector<16x1xf32>
    %301 = vector.broadcast %300 : vector<16x1xf32> to vector<16x32xf32>
    %302 = arith.subf %292, %301 : vector<16x32xf32>
    %303 = arith.mulf %302, %302 : vector<16x32xf32>
    %cst_81 = arith.constant dense<0.000000e+00> : vector<16xf32>
    %304 = vector.multi_reduction <add>, %303, %cst_81 [1] : vector<16x32xf32> to vector<16xf32>
    %305 = vector.shape_cast %304 : vector<16xf32> to vector<16x1xf32>
    %cst_82 = arith.constant 3.200000e+01 : f32
    %306 = vector.broadcast %cst_82 : f32 to vector<16x1xf32>
    %307 = arith.divf %305, %306 : vector<16x1xf32>
    %308 = vector.broadcast %300 : vector<16x1xf32> to vector<16x32xf32>
    %309 = arith.subf %292, %308 : vector<16x32xf32>
    %cst_83 = arith.constant 9.99999974E-6 : f32
    %310 = vector.broadcast %cst_83 : f32 to vector<16x1xf32>
    %311 = arith.addf %307, %310 : vector<16x1xf32>
    %312 = math.rsqrt %311 : vector<16x1xf32>
    %313 = vector.broadcast %312 : vector<16x1xf32> to vector<16x32xf32>
    %314 = arith.mulf %309, %313 : vector<16x32xf32>
    %315 = vector.shape_cast %294 : vector<32xf32> to vector<1x32xf32>
    %316 = vector.broadcast %315 : vector<1x32xf32> to vector<16x32xf32>
    %317 = arith.mulf %314, %316 : vector<16x32xf32>
    %318 = vector.shape_cast %296 : vector<32xf32> to vector<1x32xf32>
    %319 = vector.broadcast %318 : vector<1x32xf32> to vector<16x32xf32>
    %320 = arith.addf %317, %319 : vector<16x32xf32>
    %c1_84 = arith.constant 1 : index
    %c0_85 = arith.constant 0 : index
    %c0_86 = arith.constant 0 : index
    %321 = vector.load %arg4[%c1_84, %c0_85, %c0_86] : memref<2x32x64xf32, #tpu.memory_space<vmem>>, vector<1x32x64xf32>
    %322 = vector.shape_cast %321 : vector<1x32x64xf32> to vector<32x64xf32>
    %cst_87 = arith.constant dense<0.000000e+00> : vector<16x64xf32>
    %323 = tpu.matmul %320, %322, %cst_87 {dimension_numbers = #tpu.dot_dimension_numbers<[1], [0], [0], [1], [0, 0, 1, 1], [], []>} : vector<16x32xf32>, vector<32x64xf32>, vector<16x64xf32> -> vector<16x64xf32>
    %324 = vector.extract_strided_slice %205 {offsets = [4, 0], sizes = [1, 64], strides = [1, 1]} : vector<8x96xf32> to vector<1x64xf32>
    %325 = vector.shape_cast %324 : vector<1x64xf32> to vector<64xf32>
    %326 = vector.shape_cast %325 : vector<64xf32> to vector<1x64xf32>
    %327 = vector.broadcast %326 : vector<1x64xf32> to vector<16x64xf32>
    %328 = arith.addf %323, %327 : vector<16x64xf32>
    %cst_88 = arith.constant 5.000000e-01 : f32
    %329 = vector.broadcast %cst_88 : f32 to vector<16x64xf32>
    %330 = arith.mulf %329, %328 : vector<16x64xf32>
    %cst_89 = arith.constant 0.707106769 : f32
    %331 = vector.broadcast %cst_89 : f32 to vector<16x64xf32>
    %332 = arith.mulf %328, %331 : vector<16x64xf32>
    %333 = math.erf %332 : vector<16x64xf32>
    %cst_90 = arith.constant 1.000000e+00 : f32
    %334 = vector.broadcast %cst_90 : f32 to vector<16x64xf32>
    %335 = arith.addf %334, %333 : vector<16x64xf32>
    %336 = arith.mulf %330, %335 : vector<16x64xf32>
    %c1_91 = arith.constant 1 : index
    %c0_92 = arith.constant 0 : index
    %c0_93 = arith.constant 0 : index
    %337 = vector.load %arg5[%c1_91, %c0_92, %c0_93] : memref<2x64x32xf32, #tpu.memory_space<vmem>>, vector<1x64x32xf32>
    %338 = vector.shape_cast %337 : vector<1x64x32xf32> to vector<64x32xf32>
    %cst_94 = arith.constant dense<0.000000e+00> : vector<16x32xf32>
    %339 = tpu.matmul %336, %338, %cst_94 {dimension_numbers = #tpu.dot_dimension_numbers<[1], [0], [0], [1], [0, 0, 1, 1], [], []>} : vector<16x64xf32>, vector<64x32xf32>, vector<16x32xf32> -> vector<16x32xf32>
    %340 = vector.extract_strided_slice %205 {offsets = [5, 0], sizes = [1, 32], strides = [1, 1]} : vector<8x96xf32> to vector<1x32xf32>
    %341 = vector.shape_cast %340 : vector<1x32xf32> to vector<32xf32>
    %342 = vector.shape_cast %341 : vector<32xf32> to vector<1x32xf32>
    %343 = vector.broadcast %342 : vector<1x32xf32> to vector<16x32xf32>
    %344 = arith.addf %339, %343 : vector<16x32xf32>
    %345 = arith.addf %320, %344 : vector<16x32xf32>
    %346 = vector.extract_strided_slice %205 {offsets = [6, 0], sizes = [1, 32], strides = [1, 1]} : vector<8x96xf32> to vector<1x32xf32>
    %347 = vector.shape_cast %346 : vector<1x32xf32> to vector<32xf32>
    %348 = vector.extract_strided_slice %205 {offsets = [7, 0], sizes = [1, 32], strides = [1, 1]} : vector<8x96xf32> to vector<1x32xf32>
    %349 = vector.shape_cast %348 : vector<1x32xf32> to vector<32xf32>
    %cst_95 = arith.constant dense<0.000000e+00> : vector<16xf32>
    %350 = vector.multi_reduction <add>, %345, %cst_95 [1] : vector<16x32xf32> to vector<16xf32>
    %351 = vector.shape_cast %350 : vector<16xf32> to vector<16x1xf32>
    %cst_96 = arith.constant 3.200000e+01 : f32
    %352 = vector.broadcast %cst_96 : f32 to vector<16x1xf32>
    %353 = arith.divf %351, %352 : vector<16x1xf32>
    %354 = vector.broadcast %353 : vector<16x1xf32> to vector<16x32xf32>
    %355 = arith.subf %345, %354 : vector<16x32xf32>
    %356 = arith.mulf %355, %355 : vector<16x32xf32>
    %cst_97 = arith.constant dense<0.000000e+00> : vector<16xf32>
    %357 = vector.multi_reduction <add>, %356, %cst_97 [1] : vector<16x32xf32> to vector<16xf32>
    %358 = vector.shape_cast %357 : vector<16xf32> to vector<16x1xf32>
    %cst_98 = arith.constant 3.200000e+01 : f32
    %359 = vector.broadcast %cst_98 : f32 to vector<16x1xf32>
    %360 = arith.divf %358, %359 : vector<16x1xf32>
    %361 = vector.broadcast %353 : vector<16x1xf32> to vector<16x32xf32>
    %362 = arith.subf %345, %361 : vector<16x32xf32>
    %cst_99 = arith.constant 9.99999974E-6 : f32
    %363 = vector.broadcast %cst_99 : f32 to vector<16x1xf32>
    %364 = arith.addf %360, %363 : vector<16x1xf32>
    %365 = math.rsqrt %364 : vector<16x1xf32>
    %366 = vector.broadcast %365 : vector<16x1xf32> to vector<16x32xf32>
    %367 = arith.mulf %362, %366 : vector<16x32xf32>
    %368 = vector.shape_cast %347 : vector<32xf32> to vector<1x32xf32>
    %369 = vector.broadcast %368 : vector<1x32xf32> to vector<16x32xf32>
    %370 = arith.mulf %367, %369 : vector<16x32xf32>
    %371 = vector.shape_cast %349 : vector<32xf32> to vector<1x32xf32>
    %372 = vector.broadcast %371 : vector<1x32xf32> to vector<16x32xf32>
    %373 = arith.addf %370, %372 : vector<16x32xf32>
    %c0_100 = arith.constant 0 : index
    %c0_101 = arith.constant 0 : index
    %374 = vector.load %arg7[%c0_100, %c0_101] : memref<16x32xf32, #tpu.memory_space<vmem>>, vector<16x32xf32>
    tpu.vector_store %arg7[%c0_100, %c0_101], %373 {strides = array<i32>} : memref<16x32xf32, #tpu.memory_space<vmem>>, vector<16x32xf32>,
    return
  }
}

</mosaic_0001>

<bundles_post_ra>
// kernel: unmt_encoder_forward.1
= control target key start
LH: loop header
LB: loop body
LE: loop exit
PB: predicated region body
PF: predicated region fallthrough
CT: control target
= control target key end

     0   :  { %vm31_vm0 = vcmask 261120   ;;  %s2517_s0 = inlined_call_operand.vmem [shape: f32[16,32], index: 0, kind: input, shape index: {}]   ;;  %s2518_s1 = inlined_call_operand.vmem [shape: f32[16,16], index: 1, kind: input, shape index: {}]   ;;  %s2519_s2 = inlined_call_operand.vmem [shape: f32[2,32], index: 2, kind: input, shape index: {}]   ;;  %s2520_s3 = inlined_call_operand.vmem [shape: f32[2,32,128], index: 3, kind: input, shape index: {}]   ;;  %s2521_s4 = inlined_call_operand.vmem [shape: f32[2,32,64], index: 4, kind: input, shape index: {}]   ;;  %s2522_s5 = inlined_call_operand.vmem [shape: f32[2,64,32], index: 5, kind: input, shape index: {}]   ;;  %s2523_s6 = inlined_call_operand.vmem [shape: f32[2,8,96], index: 6, kind: input, shape index: {}]   ;;  %s2524_s7 = inlined_call_operand.hbm [shape: f32[16,32], index: 7, kind: output, shape index: {}]  }
   0x1   :  { %v27_v0 = vld [vmem:[%s2517_s0] sm:$0xff] }
   0x2   :  { %v32_v1 = vsel %vm31_vm0, %v27_v0, 0.0 }
   0x3   :  { %12 = vsyncpa [#allocation3], 0  ;;  %33 = vadd.xlane.f32.xlu0 %v32_v1  ;;  %v28_v2 = vld [vmem:[%s2517_s0 + $0x8] sm:$0xff]  ;;  %v1924_v4 = vmov 32.0   ;;  %v1999_v21 = vld [vmem:[%s2520_s3 + $0x18] sm:$0xff]  ;;  %s1925_s17 = smov 88  }
   0x4   :  { %v35_v3 = vsel %vm31_vm0, %v28_v2, 0.0  ;;  %1802 = vrcp.f32 %v1924_v4  ;;  %114 = vmatpush.msra.mxu0 %v1999_v21  ;;  %v2005_v22 = vld [vmem:[%s2520_s3 + $0x10] sm:$0xff]  ;;  %v2011_v23 = vld [vmem:[%s2520_s3 + $0x8] sm:$0xff]  ;;  %v2017_v24 = vld [vmem:[%s2520_s3] sm:$0xff]  ;;  %s1926_s18 = smov 80   ;;  %s1927_s19 = smov 96  }
   0x5   :  { %v1760_v25 = vpack.i.bf16 %v2005_v22, %v1999_v21  ;;  %v1765_v26 = vpack.i.bf16 %v2017_v24, %v2011_v23  ;;  %v1800_v41 = vld [vmem:[%s2519_s2] ss:$0 sm:$0xff]  ;;  %v1801_v45 = vld [vmem:[%s2519_s2 + $0x1] ss:$0 sm:$0xff]  ;;  %s1928_s20 = smov 112   ;;  %s1929_s21 = smov 72  }
   0x6   :  { %115 = vmatpush.msra.mxu0 %v2005_v22  ;;  %v2043_v55 = vld [vmem:[%s2523_s6] sm:$0xff]  ;;  %s1930_s22 = smov 120   ;;  %s1931_s23 = smov 104   ;;  %vm134_vm8 = vcmask 64512   ;;  %vm166_vm9 = vcmask 130048   ;;  %vm540_vm10 = vcmask 195584  }
   0x7   :  { %v125_v56 = vperm.slane %v2043_v55, 0  ;;  %s1932_s0 = smov 64   ;;  %s1933_s28 = smov 56  }
   0x8   :  { %116 = vmatpush.msra.mxu0 %v2011_v23  ;;  %s1934_s29 = smov 40   ;;  %s1935_s30 = smov 48  }
   0x9   :  { %s1936_s8 = smov 32   ;;  %s1937_s9 = smov 8  }
   0xa   :  { %v1803_v5 = vpop.eup %1802  ;;  %117 = vmatpush.msra.mxu0 %v2017_v24  ;;  %s1938_s10 = smov 24   ;;  %s1939_s11 = smov 16  }
   0xb   :  { %36 = vadd.xlane.f32.xlu0 %v35_v3  ;;  %v39_v6 = vmul.f32 32.0, %v1803_v5  ;;  %vm43_vm1 = vweird.f32 %v1803_v5 }
   0xd   :  { %v40_v7 = vsub.f32 1.0, %v39_v6 }
   0xf   :  { %v41_v8 = vmul.f32 %v1803_v5, %v40_v7 }
  0x11   :  { %v42_v9 = vadd.f32 %v1803_v5, %v41_v8 }
  0x13   :  { %v1990_v10 = vsel %vm43_vm1, %v1803_v5, %v42_v9 }
  0x76   :  { %v34_v11 = vpop.xlane.xlu0 %33 }
  0x77   :  { %v45_v12 = vmul.f32 %v1990_v10, %v34_v11 }
  0x79   :  { %v47_v13 = vsub.f32 %v27_v0, %v45_v12  ;;  %v2099_v12 = vld [vmem:[%s2518_s1] sm:$0xff] }
  0x7b   :  { %v49_v14 = vmul.f32 %v47_v13, %v47_v13 }
  0x7d   :  { %v51_v15 = vsel %vm31_vm0, %v49_v14, 0.0 }
  0x7e   :  { %52 = vadd.xlane.f32.xlu1 %v51_v15  ;;  %v37_v16 = vpop.xlane.xlu0 %36 }
  0x7f   :  { %v46_v17 = vmul.f32 %v1990_v10, %v37_v16  ;;  %v90_v16 = vld [vmem:[%s2518_s1 + $0x8] sm:$0xff] }
  0x81   :  { %v48_v18 = vsub.f32 %v28_v2, %v46_v17 }
  0x83   :  { %v50_v19 = vmul.f32 %v48_v18, %v48_v18 }
  0x85   :  { %v54_v20 = vsel %vm31_vm0, %v50_v19, 0.0 }
  0x86   :  { %55 = vadd.xlane.f32.xlu1 %v54_v20 }
  0xf1   :  { %v53_v27 = vpop.xlane.xlu1 %52 }
  0xf2   :  { %v57_v28 = vmul.f32 %v53_v27, %v1990_v10 }
  0xf4   :  { %v59_v29 = vadd.f32 1e-05, %v57_v28 }
  0xf6   :  { %1804 = vrsqrt.f32 %v59_v29  ;;  %vm67_vm3 = vweird.f32 %v59_v29 }
  0xf9   :  { %v56_v30 = vpop.xlane.xlu1 %55 }
  0xfa   :  { %v58_v31 = vmul.f32 %v56_v30, %v1990_v10 }
  0xfc   :  { %v1805_v32 = vpop.eup %1804  ;;  %v60_v33 = vadd.f32 1e-05, %v58_v31 }
  0xfd   :  { %v62_v34 = vmul.f32 %v1805_v32, %v59_v29  ;;  %vm68_vm2 = vweird.f32 %v1805_v32 }
  0xfe   :  { %1806 = vrsqrt.f32 %v60_v33  ;;  %vm69_vm4 = vmor %vm67_vm3, %vm68_vm2  ;;  %vm77_vm6 = vweird.f32 %v60_v33 }
  0xff   :  { %v63_v35 = vmul.f32 %v1805_v32, %v62_v34 }
 0x101   :  { %v64_v36 = vmul.f32 0.5, %v63_v35 }
 0x103   :  { %v65_v37 = vsub.f32 1.5, %v64_v36 }
 0x104   :  { %v1807_v38 = vpop.eup %1806 }
 0x105   :  { %v66_v39 = vmul.f32 %v1805_v32, %v65_v37  ;;  %v72_v40 = vmul.f32 %v1807_v38, %v60_v33  ;;  %vm78_vm5 = vweird.f32 %v1807_v38 }
 0x106   :  { %vm79_vm7 = vmor %vm77_vm6, %vm78_vm5  ;;  %vm772_vm6 = vcmask 523264  }
 0x107   :  { %v70_v42 = vsel %vm69_vm4, %v1805_v32, %v66_v39  ;;  %v73_v43 = vmul.f32 %v1807_v38, %v72_v40 }
 0x108   :  { %v81_v44 = vmul.f32 %v70_v42, %v47_v13 }
 0x109   :  { %v74_v46 = vmul.f32 0.5, %v73_v43 }
 0x10a   :  { %v84_v47 = vmul.f32 %v1800_v41, %v81_v44 }
 0x10b   :  { %v75_v48 = vsub.f32 1.5, %v74_v46 }
 0x10c   :  { %v2032_v49 = vadd.f32 %v1801_v45, %v84_v47 }
 0x10d   :  { %v76_v50 = vmul.f32 %v1807_v38, %v75_v48 }
 0x10e   :  { %1637 = vmatmul.msk.f32.vlgmr.msra.gmra.mxu0 %vm31_vm0, %v2032_v49 }
 0x10f   :  { %v80_v51 = vsel %vm79_vm7, %v1807_v38, %v76_v50 }
 0x110   :  { %v82_v52 = vmul.f32 %v80_v51, %v48_v18 }
 0x112   :  { %v85_v53 = vmul.f32 %v1800_v41, %v82_v52 }
 0x114   :  { %v2036_v54 = vadd.f32 %v1801_v45, %v85_v53 }
 0x116   :  { %1638 = vmatmul.msk.f32.gmra.mxu0 %vm31_vm0, %v2036_v54 }
 0x18b   :  { %v119_v57 = vpop.f32.mrf.mxu0 }
 0x18c   :  { %v2046_v58 = vadd.f32 %v125_v56, %v119_v57 }
 0x18e   :  { %228 = vrot.lane.b32.xlu1 %v2046_v58, %s1925_s17 }
 0x193   :  { %v122_v59 = vpop.f32.mrf.mxu0 }
 0x194   :  { %v2050_v60 = vadd.f32 %v125_v56, %v122_v59 }
 0x196   :  { %326 = vrot.lane.b32.xlu1 %v2050_v60, %s1926_s18  ;;  %230 = vrot.lane.b32.xlu0 %v2050_v60, %s1925_s17  ;;  %v2124_v44 = vpack.i.bf16 %v2046_v58, %v2050_v60 }
 0x197   :  { %132 = vrot.lane.b32.xlu2 %v2050_v60, %s1927_s19 }
 0x19e   :  { %320 = vrot.lane.b32.xlu1 %v2046_v58, %s1928_s20  ;;  %420 = vrot.lane.b32.xlu0 %v2046_v58, %s1929_s21 }
 0x19f   :  { %130 = vrot.lane.b32.xlu2 %v2046_v58, %s1927_s19 }
 0x1a6   :  { %324 = vrot.lane.b32.xlu0 %v2046_v58, %s1926_s18 }
 0x1a7   :  { %224 = vrot.lane.b32.xlu2 %v2046_v58, %s1930_s22 }
 0x1ae   :  { %322 = vrot.lane.b32.xlu0 %v2050_v60, %s1928_s20 }
 0x1af   :  { %226 = vrot.lane.b32.xlu2 %v2050_v60, %s1930_s22 }
 0x1b7   :  { %422 = vrot.lane.b32.xlu2 %v2050_v60, %s1929_s21 }
 0x1bf   :  { %416 = vrot.lane.b32.xlu2 %v2046_v58, %s1931_s23 }
 0x1c7   :  { %418 = vrot.lane.b32.xlu2 %v2050_v60, %s1931_s23 }
 0x1f1   :  { %v133_v61 = vpop.permute.xlu2 %132 }
 0x1f2   :  { %1639 = vmatpush.xpose.msk.msra.mxu1 %vm134_vm8, %v133_v61 }
 0x1f9   :  { %v131_v62 = vpop.permute.xlu2 %130 }
 0x1fa   :  { %1640 = vmatpush.xpose.msk.msra.mxu1 %vm134_vm8, %v131_v62 }
 0x1fd   :  { %1641 = vmatmul.msk.f32.vlgmr.msra.gmra.mxu1 %vm134_vm8, %v2046_v58 }
 0x200   :  { %v229_v63 = vpop.permute.xlu1 %228 }
 0x201   :  { %v225_v0 = vpop.permute.xlu2 %224 }
 0x205   :  { %1642 = vmatmul.msk.f32.gmra.mxu1 %vm134_vm8, %v2050_v60 }
 0x208   :  { %v231_v1 = vpop.permute.xlu0 %230  ;;  %v327_v2 = vpop.permute.xlu1 %326 }
 0x209   :  { %v227_v3 = vpop.permute.xlu2 %226  ;;  %1645 = vmatpush.xpose.msk.msra.mxu3 %vm134_vm8, %v231_v1  ;;  %1651 = vmatpush.xpose.msk.msrb.mxu0 %vm134_vm8, %v327_v2 }
 0x20d   :  { %1646 = vmatpush.xpose.msk.msra.mxu3 %vm134_vm8, %v229_v63 }
 0x210   :  { %v421_v4 = vpop.permute.xlu0 %420  ;;  %1647 = vmatmul.msk.f32.vlgmr.msra.gmra.mxu3 %vm134_vm8, %v225_v0  ;;  %v321_v7 = vpop.permute.xlu1 %320 }
 0x211   :  { %v423_v5 = vpop.permute.xlu2 %422 }
 0x212   :  { %1657 = vmatpush.xpose.msk.msrb.mxu3 %vm134_vm8, %v423_v5 }
 0x216   :  { %1658 = vmatpush.xpose.msk.msrb.mxu3 %vm134_vm8, %v421_v4 }
 0x218   :  { %v325_v6 = vpop.permute.xlu0 %324  ;;  %1648 = vmatmul.msk.f32.gmra.mxu3 %vm134_vm8, %v227_v3 }
 0x219   :  { %1652 = vmatpush.xpose.msk.msrb.mxu0 %vm134_vm8, %v325_v6  ;;  %v417_v8 = vpop.permute.xlu2 %416 }
 0x21c   :  { %1653 = vmatmul.msk.f32.vlgmr.msrb.gmra.mxu0 %vm134_vm8, %v321_v7 }
 0x220   :  { %1659 = vmatmul.msk.f32.vlgmr.msrb.gmra.mxu3 %vm134_vm8, %v417_v8  ;;  %v323_v9 = vpop.permute.xlu0 %322 }
 0x221   :  { %v419_v11 = vpop.permute.xlu2 %418 }
 0x224   :  { %1654 = vmatmul.msk.f32.gmra.mxu0 %vm134_vm8, %v323_v9 }
 0x228   :  { %1660 = vmatmul.msk.f32.gmra.mxu3 %vm134_vm8, %v419_v11 }
 0x27a   :  { %v160_v13 = vpop.f32.mrf.mxu1 }
 0x27b   :  { %v161_v14 = vadd.f32 %v160_v13, %v2099_v12 }
 0x27d   :  { %v167_v15 = vsel %vm166_vm9, %v161_v14, -inf }
 0x27e   :  { %168 = vmax.xlane.f32.xlu2 %v167_v15 }
 0x282   :  { %v163_v17 = vpop.f32.mrf.mxu1 }
 0x283   :  { %v164_v18 = vadd.f32 %v163_v17, %v90_v16 }
 0x285   :  { %v170_v19 = vsel %vm166_vm9, %v164_v18, -inf }
 0x286   :  { %171 = vmax.xlane.f32.xlu1 %v170_v19 }
 0x293   :  { %v257_v20 = vpop.f32.mrf.mxu3 }
 0x294   :  { %v258_v33 = vadd.f32 %v257_v20, %v2099_v12 }
 0x296   :  { %v263_v38 = vsel %vm166_vm9, %v258_v33, -inf }
 0x299   :  { %v353_v27 = vpop.f32.mrf.mxu0 }
 0x29a   :  { %v354_v28 = vadd.f32 %v353_v27, %v2099_v12 }
 0x29b   :  { %v260_v29 = vpop.f32.mrf.mxu3 }
 0x29c   :  { %v2108_v30 = vadd.f32 %v260_v29, %v90_v16  ;;  %v359_v31 = vsel %vm166_vm9, %v354_v28, -inf }
 0x29d   :  { %360 = vmax.xlane.f32.xlu0 %v359_v31 }
 0x29e   :  { %v266_v32 = vsel %vm166_vm9, %v2108_v30, -inf }
 0x29f   :  { %267 = vmax.xlane.f32.xlu2 %v266_v32 }
 0x2a1   :  { %v356_v34 = vpop.f32.mrf.mxu0 }
 0x2a2   :  { %v2114_v35 = vadd.f32 %v356_v34, %v90_v16 }
 0x2a3   :  { %v449_v36 = vpop.f32.mrf.mxu3 }
 0x2a4   :  { %v362_v37 = vsel %vm166_vm9, %v2114_v35, -inf  ;;  %v450_v39 = vadd.f32 %v449_v36, %v2099_v12 }
 0x2a5   :  { %363 = vmax.xlane.f32.xlu1 %v362_v37  ;;  %264 = vmax.xlane.f32.xlu0 %v263_v38 }
 0x2a6   :  { %v455_v42 = vsel %vm166_vm9, %v450_v39, -inf }
 0x2ab   :  { %v452_v40 = vpop.f32.mrf.mxu3 }
 0x2ac   :  { %v453_v41 = vadd.f32 %v452_v40, %v90_v16 }
 0x2ad   :  { %456 = vmax.xlane.f32.xlu1 %v455_v42 }
 0x2ae   :  { %v458_v43 = vsel %vm166_vm9, %v453_v41, -inf }
 0x2af   :  { %459 = vmax.xlane.f32.xlu2 %v458_v43 }
 0x2c7   :  { %1741 = vrot.lane.b32.xlu2 %v2124_v44, %s1932_s0 }
 0x2f1   :  { %v169_v45 = vpop.xlane.xlu2 %168 }
 0x2f2   :  { %v173_v46 = vsub.f32 %v161_v14, %v169_v45 }
 0x2f4   :  { %v175_v47 = vmul.f32 1.442695, %v173_v46 }
 0x2f6   :  { %1808 = vpow2.f32 %v175_v47 }
 0x2f9   :  { %v172_v48 = vpop.xlane.xlu1 %171 }
 0x2fa   :  { %v174_v50 = vsub.f32 %v164_v18, %v172_v48 }
 0x2fc   :  { %v1809_v51 = vpop.eup %1808  ;;  %v177_v52 = vmul.f32 1.442695, %v174_v50 }
 0x2fd   :  { %v179_v53 = vsel %vm166_vm9, %v1809_v51, 0.0 }
 0x2fe   :  { %1810 = vpow2.f32 %v177_v52  ;;  %180 = vadd.xlane.f32.xlu0 %v179_v53 }
 0x304   :  { %v1811_v56 = vpop.eup %1810 }
 0x305   :  { %v182_v57 = vsel %vm166_vm9, %v1811_v56, 0.0 }
 0x306   :  { %183 = vadd.xlane.f32.xlu1 %v182_v57 }
 0x310   :  { %v361_v58 = vpop.xlane.xlu0 %360 }
 0x311   :  { %v365_v59 = vsub.f32 %v354_v28, %v361_v58 }
 0x312   :  { %v268_v63 = vpop.xlane.xlu2 %267 }
 0x313   :  { %v367_v60 = vmul.f32 1.442695, %v365_v59  ;;  %v270_v16 = vsub.f32 %v2108_v30, %v268_v63 }
 0x315   :  { %1812 = vpow2.f32 %v367_v60  ;;  %v273_v17 = vmul.f32 1.442695, %v270_v16 }
 0x318   :  { %v265_v61 = vpop.xlane.xlu0 %264  ;;  %v364_v15 = vpop.xlane.xlu1 %363 }
 0x319   :  { %v269_v62 = vsub.f32 %v258_v33, %v265_v61 }
 0x31b   :  { %v2130_v0 = vpop.eup %1812  ;;  %v271_v1 = vmul.f32 1.442695, %v269_v62 }
 0x31c   :  { %v371_v2 = vsel %vm166_vm9, %v2130_v0, 0.0 }
 0x31d   :  { %1814 = vpow2.f32 %v271_v1  ;;  %372 = vadd.xlane.f32.xlu2 %v371_v2 }
 0x31f   :  { %1746 = vrot.lane.b32.xlu1 %v2124_v44, %s1933_s28 }
 0x320   :  { %v457_v18 = vpop.xlane.xlu1 %456 }
 0x321   :  { %v461_v19 = vsub.f32 %v450_v39, %v457_v18 }
 0x322   :  { %v460_v3 = vpop.xlane.xlu2 %459 }
 0x323   :  { %v1815_v4 = vpop.eup %1814  ;;  %v462_v9 = vsub.f32 %v453_v41, %v460_v3  ;;  %v463_v20 = vmul.f32 1.442695, %v461_v19  ;;  %v366_v41 = vsub.f32 %v2114_v35, %v364_v15 }
 0x324   :  { %v275_v5 = vsel %vm166_vm9, %v1815_v4, 0.0 }
 0x325   :  { %276 = vadd.xlane.f32.xlu0 %v275_v5  ;;  %v465_v11 = vmul.f32 1.442695, %v462_v9  ;;  %v369_v43 = vmul.f32 1.442695, %v366_v41 }
 0x327   :  { %1816 = vpow2.f32 %v465_v11 }
 0x328   :  { %1818 = vpow2.f32 %v273_v17 }
 0x329   :  { %1820 = vpow2.f32 %v463_v20 }
 0x32a   :  { %v1742_v6 = vpop.permute.xlu2 %1741 }
 0x32b   :  { %v1743_v7 = vunpack.i.l.bf16 %v1742_v6  ;;  %v1744_v8 = vunpack.i.h.bf16 %v1742_v6 }
 0x32d   :  { %215 = vmatpush.msra.mxu2 %v1743_v7  ;;  %v2139_v13 = vpop.eup %1816 }
 0x32e   :  { %v470_v14 = vsel %vm166_vm9, %v2139_v13, 0.0  ;;  %v1819_v27 = vpop.eup %1818 }
 0x32f   :  { %216 = vmatpush.msra.mxu2 %v1744_v8  ;;  %v278_v28 = vsel %vm166_vm9, %v1819_v27, 0.0  ;;  %v1821_v29 = vpop.eup %1820 }
 0x330   :  { %v467_v31 = vsel %vm166_vm9, %v1821_v29, 0.0 }
 0x335   :  { %1761 = vrot.lane.b32.xlu2 %v1760_v25, %s1936_s8 }
 0x339   :  { %1751 = vrot.lane.b32.xlu0 %v2124_v44, %s1934_s29 }
 0x33d   :  { %1766 = vrot.lane.b32.xlu2 %v1765_v26, %s1936_s8 }
 0x349   :  { %471 = vadd.xlane.f32.xlu1 %v470_v14 }
 0x363   :  { %279 = vadd.xlane.f32.xlu0 %v278_v28 }
 0x36b   :  { %468 = vadd.xlane.f32.xlu0 %v467_v31 }
 0x371   :  { %v181_v32 = vpop.xlane.xlu0 %180 }
 0x372   :  { %1822 = vrcp.f32 %v181_v32 }
 0x378   :  { %v1823_v33 = vpop.eup %1822 }
 0x379   :  { %v184_v34 = vpop.xlane.xlu1 %183  ;;  %v187_v36 = vmul.f32 %v1823_v33, %v1809_v51 }
 0x37a   :  { %1824 = vrcp.f32 %v184_v34 }
 0x37b   :  { %1643 = vmatmul.msk.f32.vlgmr.msra.gmra.mxu2 %vm166_vm9, %v187_v36 }
 0x37f   :  { %1756 = vrot.lane.b32.xlu0 %v2124_v44, %s1935_s30 }
 0x380   :  { %v1825_v30 = vpop.eup %1824 }
 0x381   :  { %v188_v37 = vmul.f32 %v1825_v30, %v1811_v56  ;;  %v543_v30 = vperm.slane %v2043_v55, 1 }
 0x383   :  { %1644 = vmatmul.msk.f32.gmra.mxu2 %vm166_vm9, %v188_v37 }
 0x390   :  { %v373_v60 = vpop.xlane.xlu2 %372 }
 0x391   :  { %v1747_v38 = vpop.permute.xlu1 %1746 }
 0x392   :  { %v1748_v39 = vunpack.i.l.bf16 %v1747_v38  ;;  %v1749_v40 = vunpack.i.h.bf16 %v1747_v38 }
 0x394   :  { %311 = vmatpush.msrb.mxu2 %v1748_v39 }
 0x396   :  { %312 = vmatpush.msrb.mxu2 %v1749_v40 }
 0x398   :  { %v277_v42 = vpop.xlane.xlu0 %276  ;;  %v1762_v8 = vpop.permute.xlu2 %1761 }
 0x399   :  { %1826 = vrcp.f32 %v277_v42  ;;  %v1764_v9 = vunpack.i.h.bf16 %v1762_v8  ;;  %v1763_v11 = vunpack.i.l.bf16 %v1762_v8 }
 0x39a   :  { %1828 = vpow2.f32 %v369_v43 }
 0x39b   :  { %578 = vmatpush.msra.mxu0 %v1763_v11 }
 0x39d   :  { %579 = vmatpush.msra.mxu0 %v1764_v9 }
 0x39f   :  { %v1827_v45 = vpop.eup %1826 }
 0x3a0   :  { %v283_v46 = vmul.f32 %v1827_v45, %v1815_v4  ;;  %v1829_v44 = vpop.eup %1828 }
 0x3a1   :  { %v374_v47 = vsel %vm166_vm9, %v1829_v44, 0.0 }
 0x3a2   :  { %1649 = vmatmul.msk.f32.vlgmr.msrb.gmra.mxu2 %vm166_vm9, %v283_v46 }
 0x3a9   :  { %375 = vadd.xlane.f32.xlu0 %v374_v47 }
 0x3ab   :  { %v1752_v48 = vpop.permute.xlu0 %1751 }
 0x3ac   :  { %v1753_v50 = vunpack.i.l.bf16 %v1752_v48  ;;  %v1754_v51 = vunpack.i.h.bf16 %v1752_v48 }
 0x3ae   :  { %503 = vmatpush.msra.mxu2 %v1753_v50 }
 0x3b0   :  { %504 = vmatpush.msra.mxu2 %v1754_v51 }
 0x3bc   :  { %v472_v57 = vpop.xlane.xlu1 %471 }
 0x3d6   :  { %v280_v52 = vpop.xlane.xlu0 %279 }
 0x3d7   :  { %1830 = vrcp.f32 %v280_v52 }
 0x3dd   :  { %v1831_v35 = vpop.eup %1830 }
 0x3de   :  { %v469_v53 = vpop.xlane.xlu0 %468  ;;  %v284_v56 = vmul.f32 %v1831_v35, %v1819_v27 }
 0x3df   :  { %1832 = vrcp.f32 %v469_v53 }
 0x3e0   :  { %1650 = vmatmul.msk.f32.gmra.mxu2 %vm166_vm9, %v284_v56  ;;  %1834 = vrcp.f32 %v472_v57  ;;  %v643_v56 = vld [vmem:[%s2521_s4 + $0x10] sm:$0xff]  ;;  %v642_v57 = vld [vmem:[%s2521_s4 + $0x8] sm:$0xff] }
 0x3e1   :  { %1836 = vrcp.f32 %v373_v60 }
 0x3e5   :  { %v1833_v58 = vpop.eup %1832 }
 0x3e6   :  { %v475_v59 = vmul.f32 %v1833_v58, %v1821_v29  ;;  %v1835_v61 = vpop.eup %1834  ;;  %v641_v58 = vld [vmem:[%s2521_s4] sm:$0xff] }
 0x3e7   :  { %v476_v62 = vmul.f32 %v1835_v61, %v2139_v13  ;;  %v1837_v1 = vpop.eup %1836  ;;  %v1767_v13 = vpop.permute.xlu2 %1766 }
 0x3e8   :  { %1661 = vmatmul.msk.f32.vlgmr.msra.gmra.mxu2 %vm166_vm9, %v475_v59  ;;  %v379_v22 = vmul.f32 %v1837_v1, %v2130_v0  ;;  %v1769_v14 = vunpack.i.h.bf16 %v1767_v13  ;;  %v1768_v15 = vunpack.i.l.bf16 %v1767_v13 }
 0x3ea   :  { %580 = vmatpush.msra.mxu0 %v1768_v15 }
 0x3ec   :  { %581 = vmatpush.msra.mxu0 %v1769_v14 }
 0x3f0   :  { %1662 = vmatmul.msk.f32.gmra.mxu2 %vm166_vm9, %v476_v62 }
 0x3f1   :  { %v1757_v63 = vpop.permute.xlu0 %1756 }
 0x3f2   :  { %v1758_v2 = vunpack.i.l.bf16 %v1757_v63  ;;  %v1759_v21 = vunpack.i.h.bf16 %v1757_v63 }
 0x3f4   :  { %407 = vmatpush.msrb.mxu1 %v1758_v2 }
 0x3f6   :  { %408 = vmatpush.msrb.mxu1 %v1759_v21 }
 0x3f7   :  { %1655 = vmatmul.msk.f32.vlgmr.msrb.gmra.mxu1 %vm166_vm9, %v379_v22 }
 0x3fe   :  { %v218_v25 = vpop.f32.mrf.mxu2 }
 0x406   :  { %v221_v4 = vpop.f32.mrf.mxu2 }
 0x41c   :  { %v376_v3 = vpop.xlane.xlu0 %375 }
 0x41d   :  { %1838 = vrcp.f32 %v376_v3 }
 0x423   :  { %v1839_v23 = vpop.eup %1838 }
 0x424   :  { %v380_v24 = vmul.f32 %v1839_v23, %v1829_v44  ;;  %v638_v23 = vperm.slane %v2043_v55, 3 }
 0x425   :  { %v314_v26 = vpop.f32.mrf.mxu2 }
 0x426   :  { %1656 = vmatmul.msk.f32.gmra.mxu1 %vm166_vm9, %v380_v24  ;;  %514 = vrot.lane.b32.xlu1 %v314_v26, %s1937_s9 }
 0x463   :  { %v317_v5 = vpop.f32.mrf.mxu2 }
 0x464   :  { %516 = vrot.lane.b32.xlu1 %v317_v5, %s1937_s9 }
 0x46b   :  { %v506_v6 = vpop.f32.mrf.mxu2 }
 0x46c   :  { %530 = vrot.lane.b32.xlu0 %v506_v6, %s1938_s10 }
 0x473   :  { %v509_v0 = vpop.f32.mrf.mxu2 }
 0x474   :  { %v410_v7 = vpop.f32.mrf.mxu1  ;;  %532 = vrot.lane.b32.xlu1 %v509_v0, %s1938_s10 }
 0x475   :  { %522 = vrot.lane.b32.xlu2 %v410_v7, %s1939_s11 }
 0x498   :  { %v515_v17 = vpop.permute.xlu1 %514 }
 0x499   :  { %v536_v19 = vsel %vm134_vm8, %v218_v25, %v515_v17  ;;  %v635_v25 = vperm.slane %v2043_v55, 2 }
 0x4a3   :  { %v413_v16 = vpop.f32.mrf.mxu1 }
 0x4a4   :  { %524 = vrot.lane.b32.xlu2 %v413_v16, %s1939_s11 }
 0x4cf   :  { %v523_v18 = vpop.permute.xlu2 %522 }
 0x4d0   :  { %v538_v20 = vsel %vm166_vm9, %v536_v19, %v523_v18  ;;  %v645_v19 = vperm.slane %v2043_v55, 4 }
 0x4d6   :  { %v517_v29 = vpop.permute.xlu1 %516 }
 0x4d7   :  { %v537_v31 = vsel %vm134_vm8, %v221_v4, %v517_v29 }
 0x4de   :  { %v531_v27 = vpop.permute.xlu0 %530 }
 0x4df   :  { %v541_v28 = vsel %vm540_vm10, %v538_v20, %v531_v27 }
 0x4e0   :  { %1663 = vmatmul.msk.f32.vlgmr.msra.gmra.mxu0 %vm31_vm0, %v541_v28 }
 0x4e6   :  { %v533_v33 = vpop.permute.xlu1 %532 }
 0x4fe   :  { %v525_v32 = vpop.permute.xlu2 %524 }
 0x4ff   :  { %v539_v34 = vsel %vm166_vm9, %v537_v31, %v525_v32  ;;  %v770_v32 = vld [vmem:[%s2522_s5 + $0x38] sm:$0xff] }
 0x500   :  { %v542_v36 = vsel %vm540_vm10, %v539_v34, %v533_v33  ;;  %787 = vmatpush.msra.mxu3 %v770_v32 }
 0x501   :  { %1664 = vmatmul.msk.f32.gmra.mxu0 %vm31_vm0, %v542_v36  ;;  %v769_v36 = vld [vmem:[%s2522_s5 + $0x30] sm:$0xff] }
 0x502   :  { %788 = vmatpush.msra.mxu3 %v769_v36 }
 0x55d   :  { %v583_v37 = vpop.f32.mrf.mxu0 }
 0x55e   :  { %v584_v38 = vadd.f32 %v583_v37, %v543_v30 }
 0x560   :  { %v589_v39 = vadd.f32 %v584_v38, %v2032_v49  ;;  %v768_v38 = vld [vmem:[%s2522_s5 + $0x28] sm:$0xff] }
 0x561   :  { %789 = vmatpush.msra.mxu3 %v768_v38 }
 0x562   :  { %v591_v40 = vsel %vm31_vm0, %v589_v39, 0.0 }
 0x563   :  { %592 = vadd.xlane.f32.xlu2 %v591_v40 }
 0x57e   :  { %v586_v41 = vpop.f32.mrf.mxu0 }
 0x57f   :  { %v587_v42 = vadd.f32 %v586_v41, %v543_v30  ;;  %v767_v41 = vld [vmem:[%s2522_s5 + $0x20] sm:$0xff] }
 0x580   :  { %790 = vmatpush.msra.mxu3 %v767_v41 }
 0x581   :  { %v590_v43 = vadd.f32 %v587_v42, %v2036_v54  ;;  %v644_v54 = vld [vmem:[%s2521_s4 + $0x18] sm:$0xff] }
 0x582   :  { %664 = vmatpush.msra.mxu1 %v644_v54 }
 0x583   :  { %v594_v45 = vsel %vm31_vm0, %v590_v43, 0.0 }
 0x584   :  { %595 = vadd.xlane.f32.xlu1 %v594_v45  ;;  %665 = vmatpush.msra.mxu1 %v643_v56  ;;  %v766_v45 = vld [vmem:[%s2522_s5 + $0x18] sm:$0xff] }
 0x585   :  { %791 = vmatpush.msra.mxu3 %v766_v45 }
 0x586   :  { %666 = vmatpush.msra.mxu1 %v642_v57 }
 0x588   :  { %667 = vmatpush.msra.mxu1 %v641_v58 }
 0x5d6   :  { %v593_v46 = vpop.xlane.xlu2 %592 }
 0x5d7   :  { %v597_v44 = vmul.f32 %v593_v46, %v1990_v10 }
 0x5d9   :  { %v599_v47 = vsub.f32 %v589_v39, %v597_v44  ;;  %v765_v44 = vld [vmem:[%s2522_s5 + $0x10] sm:$0xff] }
 0x5da   :  { %792 = vmatpush.msra.mxu3 %v765_v44 }
 0x5db   :  { %v601_v48 = vmul.f32 %v599_v47, %v599_v47 }
 0x5dd   :  { %v603_v50 = vsel %vm31_vm0, %v601_v48, 0.0 }
 0x5de   :  { %604 = vadd.xlane.f32.xlu0 %v603_v50  ;;  %v764_v50 = vld [vmem:[%s2522_s5 + $0x8] sm:$0xff] }
 0x5df   :  { %793 = vmatpush.msra.mxu3 %v764_v50 }
 0x5f7   :  { %v596_v51 = vpop.xlane.xlu1 %595 }
 0x5f8   :  { %v598_v49 = vmul.f32 %v596_v51, %v1990_v10 }
 0x5fa   :  { %v600_v52 = vsub.f32 %v590_v43, %v598_v49  ;;  %v763_v49 = vld [vmem:[%s2522_s5] sm:$0xff] }
 0x5fb   :  { %794 = vmatpush.msra.mxu3 %v763_v49 }
 0x5fc   :  { %v602_v35 = vmul.f32 %v600_v52, %v600_v52 }
 0x5fe   :  { %v606_v53 = vsel %vm31_vm0, %v602_v35, 0.0 }
 0x5ff   :  { %607 = vadd.xlane.f32.xlu2 %v606_v53 }
 0x651   :  { %v605_v59 = vpop.xlane.xlu0 %604 }
 0x652   :  { %v609_v60 = vmul.f32 %v605_v59, %v1990_v10 }
 0x654   :  { %v611_v61 = vadd.f32 1e-05, %v609_v60 }
 0x656   :  { %1840 = vrsqrt.f32 %v611_v61  ;;  %vm619_vm12 = vweird.f32 %v611_v61 }
 0x65c   :  { %v1841_v62 = vpop.eup %1840 }
 0x65d   :  { %v614_v63 = vmul.f32 %v1841_v62, %v611_v61  ;;  %vm620_vm11 = vweird.f32 %v1841_v62 }
 0x65e   :  { %vm621_vm13 = vmor %vm619_vm12, %vm620_vm11 }
 0x65f   :  { %v615_v1 = vmul.f32 %v1841_v62, %v614_v63 }
 0x661   :  { %v616_v2 = vmul.f32 0.5, %v615_v1 }
 0x663   :  { %v617_v21 = vsub.f32 1.5, %v616_v2 }
 0x665   :  { %v618_v22 = vmul.f32 %v1841_v62, %v617_v21 }
 0x667   :  { %v622_v3 = vsel %vm621_vm13, %v1841_v62, %v618_v22 }
 0x668   :  { %v633_v4 = vmul.f32 %v622_v3, %v599_v47 }
 0x66a   :  { %v636_v24 = vmul.f32 %v635_v25, %v633_v4 }
 0x66c   :  { %v2206_v26 = vadd.f32 %v638_v23, %v636_v24 }
 0x66e   :  { %1665 = vmatmul.msk.f32.vlgmr.msra.gmra.mxu1 %vm31_vm0, %v2206_v26 }
 0x672   :  { %v608_v5 = vpop.xlane.xlu2 %607 }
 0x673   :  { %v610_v6 = vmul.f32 %v608_v5, %v1990_v10 }
 0x675   :  { %v612_v0 = vadd.f32 1e-05, %v610_v6 }
 0x677   :  { %1842 = vrsqrt.f32 %v612_v0  ;;  %vm629_vm15 = vweird.f32 %v612_v0 }
 0x67d   :  { %v1843_v7 = vpop.eup %1842 }
 0x67e   :  { %v624_v8 = vmul.f32 %v1843_v7, %v612_v0  ;;  %vm630_vm14 = vweird.f32 %v1843_v7 }
 0x67f   :  { %vm631_vm1 = vmor %vm629_vm15, %vm630_vm14 }
 0x680   :  { %v625_v9 = vmul.f32 %v1843_v7, %v624_v8 }
 0x682   :  { %v626_v11 = vmul.f32 0.5, %v625_v9 }
 0x684   :  { %v627_v13 = vsub.f32 1.5, %v626_v11 }
 0x686   :  { %v628_v14 = vmul.f32 %v1843_v7, %v627_v13 }
 0x688   :  { %v632_v15 = vsel %vm631_vm1, %v1843_v7, %v628_v14 }
 0x689   :  { %v634_v16 = vmul.f32 %v632_v15, %v600_v52 }
 0x68b   :  { %v637_v17 = vmul.f32 %v635_v25, %v634_v16 }
 0x68d   :  { %v2211_v18 = vadd.f32 %v638_v23, %v637_v17 }
 0x68f   :  { %1666 = vmatmul.msk.f32.gmra.mxu1 %vm31_vm0, %v2211_v18 }
 0x6eb   :  { %v669_v20 = vpop.f32.mrf.mxu1 }
 0x6ec   :  { %v2216_v27 = vadd.f32 %v669_v20, %v645_v19 }
 0x6ee   :  { %v677_v28 = vmul.f32 0.70710677, %v2216_v27  ;;  %v675_v20 = vmul.f32 0.5, %v2216_v27 }
 0x6f0   :  { %v679_v29 = vmul.f32 %v677_v28, %v677_v28 }
 0x6f2   :  { %v680_v31 = vmin.f32 %v679_v29, 16.0 }
 0x6f4   :  { %v681_v33 = vmul.f32 2.1237322e-06, %v680_v31  ;;  %v692_v34 = vmul.f32 3.8918573e-05, %v680_v31 }
 0x6f6   :  { %v682_v30 = vadd.f32 0.00028619796, %v681_v33  ;;  %v693_v37 = vadd.f32 0.001143296, %v692_v34 }
 0x6f8   :  { %v683_v39 = vmul.f32 %v682_v30, %v680_v31  ;;  %v694_v40 = vmul.f32 %v693_v37, %v680_v31 }
 0x6fa   :  { %v684_v42 = vadd.f32 0.0036580483, %v683_v39  ;;  %v695_v43 = vadd.f32 0.014752088, %v694_v40 }
 0x6fc   :  { %v696_v46 = vmul.f32 %v695_v43, %v680_v31  ;;  %v685_v47 = vmul.f32 %v684_v42, %v680_v31 }
 0x6fe   :  { %v697_v48 = vadd.f32 0.112945676, %v696_v46  ;;  %v686_v52 = vadd.f32 0.05243302, %v685_v47 }
 0x700   :  { %v698_v51 = vmul.f32 %v697_v48, %v680_v31  ;;  %v687_v54 = vmul.f32 %v686_v52, %v680_v31 }
 0x702   :  { %v699_v35 = vadd.f32 0.4994258, %v698_v51  ;;  %v688_v57 = vadd.f32 0.18741608, %v687_v54 }
 0x704   :  { %v700_v53 = vmul.f32 %v699_v35, %v680_v31  ;;  %v689_v61 = vmul.f32 %v688_v57, %v680_v31 }
 0x706   :  { %v701_v56 = vadd.f32 1.0, %v700_v53  ;;  %v690_v21 = vadd.f32 1.1283791, %v689_v61 }
 0x708   :  { %1844 = vrcp.f32 %v701_v56  ;;  %v713_v22 = vand.u32 2147483648, %v701_v56  ;;  %v711_v3 = vand.u32 2147483647, %v701_v56  ;;  %vm707_vm3 = vweird.f32 %v701_v56 }
 0x709   :  { %v691_v6 = vmul.f32 %v690_v21, %v677_v28 }
 0x70a   :  { %v714_v0 = vor.u32 1.1754944e-38, %v713_v22  ;;  %vm712_vm5 = vcmp.eq.f32.partialorder %v711_v3, 8.507059e+37 }
 0x70c   :  { %v672_v58 = vpop.f32.mrf.mxu1 }
 0x70d   :  { %v2243_v59 = vadd.f32 %v672_v58, %v645_v19  ;;  %v771_v58 = vperm.slane %v2043_v55, 5 }
 0x70e   :  { %v1845_v60 = vpop.eup %1844 }
 0x70f   :  { %v703_v62 = vmul.f32 %v1845_v60, %v701_v56  ;;  %v678_v63 = vmul.f32 0.70710677, %v2243_v59  ;;  %vm708_vm2 = vweird.f32 %v1845_v60  ;;  %v676_v54 = vmul.f32 0.5, %v2243_v59 }
 0x710   :  { %vm709_vm4 = vmor %vm707_vm3, %vm708_vm2 }
 0x711   :  { %v704_v1 = vsub.f32 1.0, %v703_v62  ;;  %v719_v2 = vmul.f32 %v678_v63, %v678_v63 }
 0x713   :  { %v705_v25 = vmul.f32 %v1845_v60, %v704_v1  ;;  %v720_v4 = vmin.f32 %v719_v2, 16.0 }
 0x715   :  { %v706_v23 = vadd.f32 %v1845_v60, %v705_v25  ;;  %v721_v24 = vmul.f32 2.1237322e-06, %v720_v4  ;;  %v732_v5 = vmul.f32 3.8918573e-05, %v720_v4 }
 0x717   :  { %v710_v7 = vsel %vm709_vm4, %v1845_v60, %v706_v23  ;;  %v722_v8 = vadd.f32 0.00028619796, %v721_v24  ;;  %v733_v9 = vadd.f32 0.001143296, %v732_v5 }
 0x718   :  { %v715_v11 = vsel %vm712_vm5, %v714_v0, %v710_v7  ;;  %v2268_v7 = vld [vmem:[%s2520_s3 + $0x30] sm:$0xff] }
 0x719   :  { %v716_v13 = vmul.f32 %v715_v11, %v691_v6  ;;  %v723_v14 = vmul.f32 %v722_v8, %v720_v4  ;;  %v734_v15 = vmul.f32 %v733_v9, %v720_v4  ;;  %v2276_v9 = vld [vmem:[%s2520_s3 + $0x28] sm:$0xff]  ;;  %v2281_v11 = vld [vmem:[%s2520_s3 + $0x20] sm:$0xff] }
 0x71b   :  { %v1667_v16 = vclamps-f32 %v716_v13, 1.0  ;;  %v735_v17 = vadd.f32 0.014752088, %v734_v15  ;;  %v724_v19 = vadd.f32 0.0036580483, %v723_v14  ;;  %v1795_v13 = vpack.i.bf16 %v2281_v11, %v2276_v9 }
 0x71d   :  { %v759_v29 = vadd.f32 1.0, %v1667_v16  ;;  %v736_v31 = vmul.f32 %v735_v17, %v720_v4  ;;  %v725_v33 = vmul.f32 %v724_v19, %v720_v4 }
 0x71f   :  { %v761_v32 = vmul.f32 %v759_v29, %v675_v20  ;;  %v737_v28 = vadd.f32 0.112945676, %v736_v31  ;;  %v726_v30 = vadd.f32 0.05243302, %v725_v33 }
 0x721   :  { %v738_v34 = vmul.f32 %v737_v28, %v720_v4  ;;  %1669 = vmatmul.msk.f32.vlgmr.msra.gmra.mxu3 %vm772_vm6, %v761_v32  ;;  %v727_v39 = vmul.f32 %v726_v30, %v720_v4  ;;  %v848_v28 = vperm.slane %v2043_v55, 6 }
 0x723   :  { %v739_v36 = vadd.f32 0.4994258, %v738_v34  ;;  %v728_v40 = vadd.f32 0.18741608, %v727_v39 }
 0x725   :  { %v740_v37 = vmul.f32 %v739_v36, %v720_v4  ;;  %v729_v42 = vmul.f32 %v728_v40, %v720_v4  ;;  %v851_v36 = vperm.slane %v2043_v55, 7 }
 0x727   :  { %v741_v38 = vadd.f32 1.0, %v740_v37  ;;  %v730_v46 = vadd.f32 1.1283791, %v729_v42 }
 0x729   :  { %1846 = vrcp.f32 %v741_v38  ;;  %v753_v45 = vand.u32 2147483648, %v741_v38  ;;  %v751_v47 = vand.u32 2147483647, %v741_v38  ;;  %vm747_vm11 = vweird.f32 %v741_v38 }
 0x72a   :  { %v731_v51 = vmul.f32 %v730_v46, %v678_v63 }
 0x72b   :  { %v754_v50 = vor.u32 1.1754944e-38, %v753_v45  ;;  %vm752_vm13 = vcmp.eq.f32.partialorder %v751_v47, 8.507059e+37 }
 0x72f   :  { %v1847_v41 = vpop.eup %1846 }
 0x730   :  { %v743_v43 = vmul.f32 %v1847_v41, %v741_v38  ;;  %vm748_vm7 = vweird.f32 %v1847_v41 }
 0x731   :  { %vm749_vm12 = vmor %vm747_vm11, %vm748_vm7 }
 0x732   :  { %v744_v27 = vsub.f32 1.0, %v743_v43 }
 0x734   :  { %v745_v44 = vmul.f32 %v1847_v41, %v744_v27 }
 0x736   :  { %v746_v48 = vadd.f32 %v1847_v41, %v745_v44 }
 0x738   :  { %v750_v49 = vsel %vm749_vm12, %v1847_v41, %v746_v48 }
 0x739   :  { %v755_v52 = vsel %vm752_vm13, %v754_v50, %v750_v49  ;;  %v2302_v50 = vld [vmem:[%s2523_s6 + $0x8] sm:$0xff] }
 0x73a   :  { %v756_v35 = vmul.f32 %v755_v52, %v731_v51  ;;  %v890_v51 = vperm.slane %v2302_v50, 0 }
 0x73c   :  { %v1668_v53 = vclamps-f32 %v756_v35, 1.0 }
 0x73e   :  { %v760_v56 = vadd.f32 1.0, %v1668_v53 }
 0x740   :  { %v762_v57 = vmul.f32 %v760_v56, %v676_v54 }
 0x742   :  { %1670 = vmatmul.msk.f32.gmra.mxu3 %vm772_vm6, %v762_v57 }
 0x7a4   :  { %v796_v60 = vpop.f32.mrf.mxu3 }
 0x7a5   :  { %v797_v61 = vadd.f32 %v796_v60, %v771_v58 }
 0x7a7   :  { %v802_v62 = vadd.f32 %v797_v61, %v2206_v26 }
 0x7a9   :  { %v804_v1 = vsel %vm31_vm0, %v802_v62, 0.0 }
 0x7aa   :  { %805 = vadd.xlane.f32.xlu1 %v804_v1 }
 0x7c5   :  { %v799_v63 = vpop.f32.mrf.mxu3 }
 0x7c6   :  { %v800_v2 = vadd.f32 %v799_v63, %v771_v58 }
 0x7c8   :  { %v803_v21 = vadd.f32 %v800_v2, %v2211_v18  ;;  %v2262_v18 = vld [vmem:[%s2520_s3 + $0x38] sm:$0xff] }
 0x7c9   :  { %879 = vmatpush.msrb.mxu2 %v2262_v18  ;;  %v1790_v8 = vpack.i.bf16 %v2268_v7, %v2262_v18 }
 0x7ca   :  { %v807_v22 = vsel %vm31_vm0, %v803_v21, 0.0 }
 0x7cb   :  { %808 = vadd.xlane.f32.xlu0 %v807_v22  ;;  %880 = vmatpush.msrb.mxu2 %v2268_v7 }
 0x7cd   :  { %881 = vmatpush.msrb.mxu2 %v2276_v9 }
 0x7cf   :  { %882 = vmatpush.msrb.mxu2 %v2281_v11 }
 0x81d   :  { %v806_v59 = vpop.xlane.xlu1 %805 }
 0x81e   :  { %v810_v25 = vmul.f32 %v806_v59, %v1990_v10 }
 0x820   :  { %v812_v3 = vsub.f32 %v802_v62, %v810_v25 }
 0x822   :  { %v814_v4 = vmul.f32 %v812_v3, %v812_v3 }
 0x824   :  { %v816_v23 = vsel %vm31_vm0, %v814_v4, 0.0 }
 0x825   :  { %817 = vadd.xlane.f32.xlu2 %v816_v23 }
 0x83e   :  { %v809_v24 = vpop.xlane.xlu0 %808 }
 0x83f   :  { %v811_v26 = vmul.f32 %v809_v24, %v1990_v10  ;;  %v1896_v24 = vld [vmem:[%s2518_s1] sm:$0xff] }
 0x841   :  { %v813_v5 = vsub.f32 %v803_v21, %v811_v26 }
 0x843   :  { %v815_v6 = vmul.f32 %v813_v5, %v813_v5 }
 0x845   :  { %v819_v0 = vsel %vm31_vm0, %v815_v6, 0.0 }
 0x846   :  { %820 = vadd.xlane.f32.xlu1 %v819_v0 }
 0x898   :  { %v818_v14 = vpop.xlane.xlu2 %817 }
 0x899   :  { %v822_v15 = vmul.f32 %v818_v14, %v1990_v10  ;;  %v1897_v14 = vld [vmem:[%s2518_s1 + $0x8] sm:$0xff]  ;;  %s1941_s1 = smov 128  }
 0x89b   :  { %v824_v16 = vadd.f32 1e-05, %v822_v15 }
 0x89d   :  { %1848 = vrsqrt.f32 %v824_v16  ;;  %vm832_vm15 = vweird.f32 %v824_v16 }
 0x8a3   :  { %v1849_v17 = vpop.eup %1848 }
 0x8a4   :  { %v827_v19 = vmul.f32 %v1849_v17, %v824_v16  ;;  %vm833_vm14 = vweird.f32 %v1849_v17 }
 0x8a5   :  { %vm834_vm1 = vmor %vm832_vm15, %vm833_vm14 }
 0x8a6   :  { %v828_v20 = vmul.f32 %v1849_v17, %v827_v19 }
 0x8a8   :  { %v829_v29 = vmul.f32 0.5, %v828_v20 }
 0x8aa   :  { %v830_v31 = vsub.f32 1.5, %v829_v29 }
 0x8ac   :  { %v831_v32 = vmul.f32 %v1849_v17, %v830_v31 }
 0x8ae   :  { %v835_v33 = vsel %vm834_vm1, %v1849_v17, %v831_v32 }
 0x8af   :  { %v846_v34 = vmul.f32 %v835_v33, %v812_v3 }
 0x8b1   :  { %v849_v30 = vmul.f32 %v848_v28, %v846_v34 }
 0x8b3   :  { %v2290_v37 = vadd.f32 %v851_v36, %v849_v30 }
 0x8b5   :  { %1676 = vmatmul.msk.f32.vlgmr.msrb.gmra.mxu2 %vm31_vm0, %v2290_v37 }
 0x8b9   :  { %v821_v38 = vpop.xlane.xlu1 %820 }
 0x8ba   :  { %v823_v39 = vmul.f32 %v821_v38, %v1990_v10 }
 0x8bc   :  { %v825_v40 = vadd.f32 1e-05, %v823_v39 }
 0x8be   :  { %1850 = vrsqrt.f32 %v825_v40  ;;  %vm842_vm3 = vweird.f32 %v825_v40 }
 0x8c4   :  { %v1851_v41 = vpop.eup %1850 }
 0x8c5   :  { %v837_v42 = vmul.f32 %v1851_v41, %v825_v40  ;;  %vm843_vm2 = vweird.f32 %v1851_v41 }
 0x8c6   :  { %vm844_vm4 = vmor %vm842_vm3, %vm843_vm2 }
 0x8c7   :  { %v838_v43 = vmul.f32 %v1851_v41, %v837_v42 }
 0x8c9   :  { %v839_v27 = vmul.f32 0.5, %v838_v43 }
 0x8cb   :  { %v840_v45 = vsub.f32 1.5, %v839_v27 }
 0x8cd   :  { %v841_v46 = vmul.f32 %v1851_v41, %v840_v45 }
 0x8cf   :  { %v845_v55 = vsel %vm844_vm4, %v1851_v41, %v841_v46 }
 0x8d0   :  { %v847_v44 = vmul.f32 %v845_v55, %v813_v5 }
 0x8d2   :  { %v850_v47 = vmul.f32 %v848_v28, %v847_v44 }
 0x8d4   :  { %v2295_v48 = vadd.f32 %v851_v36, %v850_v47 }
 0x8d6   :  { %1677 = vmatmul.msk.f32.gmra.mxu2 %vm31_vm0, %v2295_v48 }
 0x938   :  { %v884_v49 = vpop.f32.mrf.mxu2 }
 0x939   :  { %v2305_v52 = vadd.f32 %v890_v51, %v884_v49 }
 0x93b   :  { %987 = vrot.lane.b32.xlu1 %v2305_v52, %s1930_s22  ;;  %991 = vrot.lane.b32.xlu2 %v2305_v52, %s1925_s17 }
 0x943   :  { %895 = vrot.lane.b32.xlu2 %v2305_v52, %s1927_s19 }
 0x94b   :  { %1183 = vrot.lane.b32.xlu2 %v2305_v52, %s1929_s21 }
 0x953   :  { %1087 = vrot.lane.b32.xlu2 %v2305_v52, %s1926_s18 }
 0x959   :  { %v887_v35 = vpop.f32.mrf.mxu2 }
 0x95a   :  { %v2317_v53 = vadd.f32 %v890_v51, %v887_v35 }
 0x95c   :  { %1085 = vrot.lane.b32.xlu2 %v2317_v53, %s1928_s20  ;;  %1185 = vrot.lane.b32.xlu1 %v2317_v53, %s1929_s21  ;;  %v1770_v41 = vpack.i.bf16 %v2305_v52, %v2317_v53 }
 0x95d   :  { %993 = vrot.lane.b32.xlu0 %v2317_v53, %s1925_s17 }
 0x964   :  { %1089 = vrot.lane.b32.xlu1 %v2317_v53, %s1926_s18 }
 0x965   :  { %897 = vrot.lane.b32.xlu0 %v2317_v53, %s1927_s19  ;;  %s1625_s19 = sshll.u32 %s2524_s7, 4  ;;  %s1626_s19 = int_to_ptr.hbm [resolvable:$true] %s1625_s19 }
 0x96c   :  { %1083 = vrot.lane.b32.xlu1 %v2305_v52, %s1928_s20 }
 0x96d   :  { %989 = vrot.lane.b32.xlu0 %v2317_v53, %s1930_s22 }
 0x975   :  { %1179 = vrot.lane.b32.xlu0 %v2305_v52, %s1931_s23 }
 0x97d   :  { %1181 = vrot.lane.b32.xlu0 %v2317_v53, %s1931_s23 }
 0x995   :  { %v992_v54 = vpop.permute.xlu2 %991 }
 0x99d   :  { %v896_v57 = vpop.permute.xlu2 %895 }
 0x9a5   :  { %v1184_v61 = vpop.permute.xlu2 %1183 }
 0x9ad   :  { %v988_v56 = vpop.permute.xlu1 %987  ;;  %v1088_v2 = vpop.permute.xlu2 %1087 }
 0x9b6   :  { %v1086_v25 = vpop.permute.xlu2 %1085 }
 0x9ce   :  { %v1186_v60 = vpop.permute.xlu1 %1185 }
 0x9cf   :  { %v994_v58 = vpop.permute.xlu0 %993 }
 0x9d0   :  { %1684 = vmatpush.xpose.msk.msrb.mxu3 %vm134_vm8, %v994_v58 }
 0x9d4   :  { %1685 = vmatpush.xpose.msk.msrb.mxu3 %vm134_vm8, %v992_v54 }
 0x9d6   :  { %v1090_v1 = vpop.permute.xlu1 %1089 }
 0x9d7   :  { %v898_v62 = vpop.permute.xlu0 %897  ;;  %1686 = vmatmul.msk.f32.vlgmr.msrb.gmra.mxu3 %vm134_vm8, %v988_v56 }
 0x9d8   :  { %1696 = vmatpush.xpose.msk.msra.mxu3 %vm134_vm8, %v1186_v60  ;;  %1678 = vmatpush.xpose.msk.msrb.mxu0 %vm134_vm8, %v898_v62 }
 0x9dc   :  { %1697 = vmatpush.xpose.msk.msra.mxu3 %vm134_vm8, %v1184_v61  ;;  %1679 = vmatpush.xpose.msk.msrb.mxu0 %vm134_vm8, %v896_v57 }
 0x9de   :  { %v1084_v22 = vpop.permute.xlu1 %1083 }
 0x9df   :  { %1680 = vmatmul.msk.f32.vlgmr.msrb.gmra.mxu0 %vm134_vm8, %v2305_v52  ;;  %v990_v63 = vpop.permute.xlu0 %989 }
 0x9e0   :  { %1690 = vmatpush.xpose.msk.msra.mxu0 %vm134_vm8, %v1090_v1  ;;  %1687 = vmatmul.msk.f32.gmra.mxu3 %vm134_vm8, %v990_v63 }
 0x9e4   :  { %1691 = vmatpush.xpose.msk.msra.mxu0 %vm134_vm8, %v1088_v2 }
 0x9e7   :  { %1681 = vmatmul.msk.f32.gmra.mxu0 %vm134_vm8, %v2317_v53  ;;  %v1180_v21 = vpop.permute.xlu0 %1179 }
 0x9e8   :  { %1698 = vmatmul.msk.f32.vlgmr.msra.gmra.mxu3 %vm134_vm8, %v1180_v21 }
 0x9ef   :  { %v1182_v59 = vpop.permute.xlu0 %1181  ;;  %1692 = vmatmul.msk.f32.vlgmr.msra.gmra.mxu0 %vm134_vm8, %v1084_v22 }
 0x9f0   :  { %1699 = vmatmul.msk.f32.gmra.mxu3 %vm134_vm8, %v1182_v59 }
 0x9f7   :  { %1693 = vmatmul.msk.f32.gmra.mxu0 %vm134_vm8, %v1086_v25 }
 0xa5a   :  { %v1020_v3 = vpop.f32.mrf.mxu3 }
 0xa5b   :  { %v1021_v4 = vadd.f32 %v1020_v3, %v2099_v12 }
 0xa5c   :  { %v924_v23 = vpop.f32.mrf.mxu0 }
 0xa5d   :  { %v925_v26 = vadd.f32 %v1896_v24, %v924_v23  ;;  %v1026_v5 = vsel %vm166_vm9, %v1021_v4, -inf }
 0xa5e   :  { %1027 = vmax.xlane.f32.xlu0 %v1026_v5 }
 0xa5f   :  { %v930_v6 = vsel %vm166_vm9, %v925_v26, -inf }
 0xa60   :  { %931 = vmax.xlane.f32.xlu1 %v930_v6 }
 0xa63   :  { %v1023_v0 = vpop.f32.mrf.mxu3 }
 0xa64   :  { %v1024_v15 = vadd.f32 %v1897_v14, %v1023_v0  ;;  %v927_v16 = vpop.f32.mrf.mxu0 }
 0xa65   :  { %v928_v12 = vadd.f32 %v1897_v14, %v927_v16 }
 0xa66   :  { %v1029_v17 = vsel %vm166_vm9, %v1024_v15, -inf }
 0xa67   :  { %1030 = vmax.xlane.f32.xlu2 %v1029_v17  ;;  %v933_v19 = vsel %vm166_vm9, %v928_v12, -inf }
 0xa68   :  { %934 = vmax.xlane.f32.xlu0 %v933_v19 }
 0xa6b   :  { %v1212_v20 = vpop.f32.mrf.mxu3 }
 0xa6c   :  { %v2366_v29 = vadd.f32 %v1896_v24, %v1212_v20  ;;  %v1116_v31 = vpop.f32.mrf.mxu0 }
 0xa6d   :  { %v1117_v32 = vadd.f32 %v1896_v24, %v1116_v31 }
 0xa6e   :  { %v1218_v28 = vsel %vm166_vm9, %v2366_v29, -inf }
 0xa6f   :  { %1219 = vmax.xlane.f32.xlu1 %v1218_v28  ;;  %v1122_v33 = vsel %vm166_vm9, %v1117_v32, -inf }
 0xa70   :  { %1123 = vmax.xlane.f32.xlu2 %v1122_v33 }
 0xa73   :  { %v1215_v34 = vpop.f32.mrf.mxu3 }
 0xa74   :  { %v1216_v36 = vadd.f32 %v1897_v14, %v1215_v34  ;;  %v1119_v30 = vpop.f32.mrf.mxu0 }
 0xa75   :  { %v2371_v38 = vadd.f32 %v1897_v14, %v1119_v30 }
 0xa76   :  { %v1221_v39 = vsel %vm166_vm9, %v1216_v36, -inf }
 0xa77   :  { %1222 = vmax.xlane.f32.xlu0 %v1221_v39  ;;  %v1125_v40 = vsel %vm166_vm9, %v2371_v38, -inf }
 0xa78   :  { %1126 = vmax.xlane.f32.xlu1 %v1125_v40 }
 0xa91   :  { %1771 = vrot.lane.b32.xlu1 %v1770_v41, %s1933_s28 }
 0xad1   :  { %v1028_v42 = vpop.xlane.xlu0 %1027 }
 0xad2   :  { %v1032_v43 = vsub.f32 %v1021_v4, %v1028_v42 }
 0xad3   :  { %v932_v27 = vpop.xlane.xlu1 %931 }
 0xad4   :  { %v1034_v45 = vmul.f32 1.442695, %v1032_v43  ;;  %v936_v46 = vsub.f32 %v925_v26, %v932_v27 }
 0xad6   :  { %1852 = vpow2.f32 %v1034_v45  ;;  %v938_v55 = vmul.f32 1.442695, %v936_v46 }
 0xad8   :  { %1854 = vpow2.f32 %v938_v55 }
 0xada   :  { %v1031_v44 = vpop.xlane.xlu2 %1030 }
 0xadb   :  { %v935_v47 = vpop.xlane.xlu0 %934  ;;  %v1033_v56 = vsub.f32 %v1024_v15, %v1031_v44 }
 0xadc   :  { %v1853_v51 = vpop.eup %1852  ;;  %v937_v49 = vsub.f32 %v928_v12, %v935_v47 }
 0xadd   :  { %v1038_v35 = vsel %vm166_vm9, %v1853_v51, 0.0  ;;  %v1036_v57 = vmul.f32 1.442695, %v1033_v56 }
 0xade   :  { %v2380_v54 = vpop.eup %1854  ;;  %v940_v52 = vmul.f32 1.442695, %v937_v49  ;;  %1039 = vadd.xlane.f32.xlu2 %v1038_v35 }
 0xadf   :  { %v942_v53 = vsel %vm166_vm9, %v2380_v54, 0.0 }
 0xae0   :  { %1856 = vpow2.f32 %v940_v52  ;;  %943 = vadd.xlane.f32.xlu0 %v942_v53 }
 0xae1   :  { %1858 = vpow2.f32 %v1036_v57 }
 0xae2   :  { %v1220_v21 = vpop.xlane.xlu1 %1219 }
 0xae3   :  { %v1124_v24 = vpop.xlane.xlu2 %1123  ;;  %v1224_v14 = vsub.f32 %v2366_v29, %v1220_v21 }
 0xae4   :  { %v1128_v26 = vsub.f32 %v1117_v32, %v1124_v24 }
 0xae5   :  { %v1226_v15 = vmul.f32 1.442695, %v1224_v14 }
 0xae6   :  { %v2384_v58 = vpop.eup %1856  ;;  %v1130_v5 = vmul.f32 1.442695, %v1128_v26 }
 0xae7   :  { %v945_v60 = vsel %vm166_vm9, %v2384_v58, 0.0  ;;  %v1859_v1 = vpop.eup %1858 }
 0xae8   :  { %946 = vadd.xlane.f32.xlu2 %v945_v60  ;;  %v1041_v2 = vsel %vm166_vm9, %v1859_v1, 0.0 }
 0xaea   :  { %v1223_v61 = vpop.xlane.xlu0 %1222 }
 0xaeb   :  { %v1225_v62 = vsub.f32 %v1216_v36, %v1223_v61  ;;  %v1127_v25 = vpop.xlane.xlu1 %1126 }
 0xaec   :  { %v1129_v32 = vsub.f32 %v2371_v38, %v1127_v25 }
 0xaed   :  { %v1228_v63 = vmul.f32 1.442695, %v1225_v62 }
 0xaee   :  { %v1132_v7 = vmul.f32 1.442695, %v1129_v32 }
 0xaef   :  { %1860 = vpow2.f32 %v1228_v63 }
 0xaf0   :  { %1042 = vadd.xlane.f32.xlu2 %v1041_v2  ;;  %1862 = vpow2.f32 %v1130_v5 }
 0xaf1   :  { %1864 = vpow2.f32 %v1226_v15 }
 0xaf4   :  { %1776 = vrot.lane.b32.xlu0 %v1770_v41, %s1932_s0 }
 0xaf5   :  { %v2390_v22 = vpop.eup %1860 }
 0xaf6   :  { %v1233_v59 = vsel %vm166_vm9, %v2390_v22, 0.0  ;;  %v1863_v6 = vpop.eup %1862 }
 0xaf7   :  { %1234 = vadd.xlane.f32.xlu1 %v1233_v59  ;;  %v1134_v0 = vsel %vm166_vm9, %v1863_v6, 0.0  ;;  %v1865_v16 = vpop.eup %1864 }
 0xaf8   :  { %v1230_v12 = vsel %vm166_vm9, %v1865_v16, 0.0 }
 0xb03   :  { %v1772_v3 = vpop.permute.xlu1 %1771 }
 0xb04   :  { %v1773_v4 = vunpack.i.l.bf16 %v1772_v3  ;;  %v1774_v23 = vunpack.i.h.bf16 %v1772_v3 }
 0xb06   :  { %1074 = vmatpush.msra.mxu2 %v1773_v4 }
 0xb08   :  { %1781 = vrot.lane.b32.xlu2 %v1770_v41, %s1934_s29  ;;  %1075 = vmatpush.msra.mxu2 %v1774_v23 }
 0xb1e   :  { %1135 = vadd.xlane.f32.xlu0 %v1134_v0 }
 0xb31   :  { %1231 = vadd.xlane.f32.xlu2 %v1230_v12 }
 0xb32   :  { %1791 = vrot.lane.b32.xlu0 %v1790_v8, %s1936_s8 }
 0xb3a   :  { %1796 = vrot.lane.b32.xlu0 %v1795_v13, %s1936_s8 }
 0xb49   :  { %1786 = vrot.lane.b32.xlu2 %v1770_v41, %s1935_s30 }
 0xb51   :  { %v1040_v17 = vpop.xlane.xlu2 %1039 }
 0xb52   :  { %1866 = vrcp.f32 %v1040_v17 }
 0xb53   :  { %v944_v31 = vpop.xlane.xlu0 %943 }
 0xb54   :  { %1868 = vrcp.f32 %v944_v31 }
 0xb58   :  { %v1867_v19 = vpop.eup %1866 }
 0xb59   :  { %v1046_v20 = vmul.f32 %v1867_v19, %v1853_v51 }
 0xb5a   :  { %v1869_v28 = vpop.eup %1868 }
 0xb5b   :  { %v947_v29 = vpop.xlane.xlu2 %946  ;;  %1688 = vmatmul.msk.f32.vlgmr.msra.gmra.mxu2 %vm166_vm9, %v1046_v20  ;;  %v950_v33 = vmul.f32 %v1869_v28, %v2380_v54 }
 0xb63   :  { %v1043_v18 = vpop.xlane.xlu2 %1042 }
 0xb64   :  { %1870 = vrcp.f32 %v1043_v18 }
 0xb65   :  { %1872 = vpow2.f32 %v1132_v7 }
 0xb66   :  { %v1777_v8 = vpop.permute.xlu0 %1776  ;;  %1874 = vrcp.f32 %v947_v29  ;;  %v1305_v29 = vperm.slane %v2302_v50, 1 }
 0xb67   :  { %v1778_v9 = vunpack.i.l.bf16 %v1777_v8  ;;  %v1779_v11 = vunpack.i.h.bf16 %v1777_v8 }
 0xb69   :  { %978 = vmatpush.msrb.mxu1 %v1778_v9 }
 0xb6a   :  { %v1871_v13 = vpop.eup %1870  ;;  %v1235_v45 = vpop.xlane.xlu1 %1234 }
 0xb6b   :  { %v1782_v34 = vpop.permute.xlu2 %1781  ;;  %979 = vmatpush.msrb.mxu1 %v1779_v11  ;;  %v1047_v36 = vmul.f32 %v1871_v13, %v1859_v1  ;;  %v1873_v38 = vpop.eup %1872 }
 0xb6c   :  { %v1783_v30 = vunpack.i.l.bf16 %v1782_v34  ;;  %1682 = vmatmul.msk.f32.vlgmr.msrb.gmra.mxu1 %vm166_vm9, %v950_v33  ;;  %v1784_v39 = vunpack.i.h.bf16 %v1782_v34  ;;  %v1875_v40 = vpop.eup %1874  ;;  %v1137_v41 = vsel %vm166_vm9, %v1873_v38, 0.0 }
 0xb6d   :  { %1689 = vmatmul.msk.f32.gmra.mxu2 %vm166_vm9, %v1047_v36  ;;  %v951_v42 = vmul.f32 %v1875_v40, %v2384_v58 }
 0xb6e   :  { %1266 = vmatpush.msrb.mxu2 %v1783_v30 }
 0xb70   :  { %1267 = vmatpush.msrb.mxu2 %v1784_v39 }
 0xb72   :  { %1138 = vadd.xlane.f32.xlu2 %v1137_v41 }
 0xb74   :  { %1683 = vmatmul.msk.f32.gmra.mxu1 %vm166_vm9, %v951_v42  ;;  %v1706_v42 = vld [vmem:[%s2521_s4 + $0x30] sm:$0xff] }
 0xb91   :  { %v1136_v43 = vpop.xlane.xlu0 %1135 }
 0xba4   :  { %v1232_v27 = vpop.xlane.xlu2 %1231  ;;  %v1792_v21 = vpop.permute.xlu0 %1791 }
 0xba5   :  { %1876 = vrcp.f32 %v1232_v27  ;;  %v1793_v59 = vunpack.i.l.bf16 %v1792_v21  ;;  %v1704_v27 = vld [vmem:[%s2521_s4 + $0x20] sm:$0xff] }
 0xba6   :  { %1878 = vrcp.f32 %v1136_v43  ;;  %v1705_v43 = vld [vmem:[%s2521_s4 + $0x28] sm:$0xff] }
 0xba7   :  { %1880 = vrcp.f32 %v1235_v45  ;;  %1340 = vmatpush.msrb.mxu0 %v1793_v59 }
 0xbab   :  { %v1877_v46 = vpop.eup %1876 }
 0xbac   :  { %v1238_v55 = vmul.f32 %v1877_v46, %v1865_v16  ;;  %v1787_v44 = vpop.permute.xlu2 %1786  ;;  %v1879_v47 = vpop.eup %1878 }
 0xbad   :  { %v1788_v51 = vunpack.i.l.bf16 %v1787_v44  ;;  %v1789_v49 = vunpack.i.h.bf16 %v1787_v44  ;;  %v1142_v35 = vmul.f32 %v1879_v47, %v1863_v6  ;;  %v1881_v54 = vpop.eup %1880  ;;  %v1797_v25 = vpop.permute.xlu0 %1796 }
 0xbae   :  { %1700 = vmatmul.msk.f32.vlgmr.msrb.gmra.mxu2 %vm166_vm9, %v1238_v55  ;;  %v1239_v56 = vmul.f32 %v1881_v54, %v2390_v22  ;;  %v1794_v22 = vunpack.i.h.bf16 %v1792_v21  ;;  %v1799_v3 = vunpack.i.h.bf16 %v1797_v25  ;;  %v1798_v4 = vunpack.i.l.bf16 %v1797_v25 }
 0xbaf   :  { %1170 = vmatpush.msra.mxu1 %v1788_v51 }
 0xbb0   :  { %1341 = vmatpush.msrb.mxu0 %v1794_v22 }
 0xbb1   :  { %1171 = vmatpush.msra.mxu1 %v1789_v49 }
 0xbb2   :  { %1694 = vmatmul.msk.f32.vlgmr.msra.gmra.mxu1 %vm166_vm9, %v1142_v35  ;;  %1342 = vmatpush.msrb.mxu0 %v1798_v4 }
 0xbb4   :  { %1343 = vmatpush.msrb.mxu0 %v1799_v3 }
 0xbb6   :  { %1701 = vmatmul.msk.f32.gmra.mxu2 %vm166_vm9, %v1239_v56  ;;  %v1397_v56 = vperm.slane %v2302_v50, 2 }
 0xbde   :  { %v1077_v52 = vpop.f32.mrf.mxu2 }
 0xbdf   :  { %1277 = vrot.lane.b32.xlu1 %v1077_v52, %s1937_s9 }
 0xbe5   :  { %v1139_v53 = vpop.xlane.xlu2 %1138 }
 0xbe6   :  { %1882 = vrcp.f32 %v1139_v53 }
 0xbe9   :  { %v981_v61 = vpop.f32.mrf.mxu1 }
 0xbec   :  { %v1883_v57 = vpop.eup %1882 }
 0xbed   :  { %v1143_v58 = vmul.f32 %v1883_v57, %v1873_v38  ;;  %v1400_v57 = vperm.slane %v2302_v50, 3 }
 0xbef   :  { %1695 = vmatmul.msk.f32.gmra.mxu1 %vm166_vm9, %v1143_v58 }
 0xbf0   :  { %v1080_v60 = vpop.f32.mrf.mxu2 }
 0xbf1   :  { %1279 = vrot.lane.b32.xlu2 %v1080_v60, %s1937_s9  ;;  %v984_v62 = vpop.f32.mrf.mxu1 }
 0xc2f   :  { %v1173_v1 = vpop.f32.mrf.mxu1 }
 0xc30   :  { %1285 = vrot.lane.b32.xlu1 %v1173_v1, %s1939_s11 }
 0xc31   :  { %v1269_v63 = vpop.f32.mrf.mxu2 }
 0xc32   :  { %1293 = vrot.lane.b32.xlu0 %v1269_v63, %s1938_s10 }
 0xc39   :  { %v1272_v2 = vpop.f32.mrf.mxu2 }
 0xc3a   :  { %1295 = vrot.lane.b32.xlu0 %v1272_v2, %s1938_s10 }
 0xc4b   :  { %v1280_v15 = vpop.permute.xlu2 %1279 }
 0xc4c   :  { %v1300_v16 = vsel %vm134_vm8, %v984_v62, %v1280_v15 }
 0xc51   :  { %v1278_v24 = vpop.permute.xlu1 %1277 }
 0xc52   :  { %v1299_v26 = vsel %vm134_vm8, %v981_v61, %v1278_v24 }
 0xc6c   :  { %v1176_v23 = vpop.f32.mrf.mxu1 }
 0xc6d   :  { %1287 = vrot.lane.b32.xlu1 %v1176_v23, %s1939_s11 }
 0xca2   :  { %v1286_v5 = vpop.permute.xlu1 %1285 }
 0xca3   :  { %v1301_v6 = vsel %vm166_vm9, %v1299_v26, %v1286_v5  ;;  %v1408_v26 = vperm.slane %v2302_v50, 4 }
 0xca4   :  { %v1294_v0 = vpop.permute.xlu0 %1293 }
 0xca5   :  { %v1303_v14 = vsel %vm540_vm10, %v1301_v6, %v1294_v0 }
 0xca6   :  { %1702 = vmatmul.msk.f32.vlgmr.msrb.gmra.mxu0 %vm31_vm0, %v1303_v14 }
 0xcac   :  { %v1296_v17 = vpop.permute.xlu0 %1295 }
 0xcdf   :  { %v1288_v12 = vpop.permute.xlu1 %1287 }
 0xce0   :  { %v1302_v19 = vsel %vm166_vm9, %v1300_v16, %v1288_v12  ;;  %v1719_v16 = vld [vmem:[%s2522_s5 + $0x78] sm:$0xff] }
 0xce1   :  { %v1304_v20 = vsel %vm540_vm10, %v1302_v19, %v1296_v17  ;;  %1550 = vmatpush.msrb.mxu3 %v1719_v16  ;;  %v1718_v19 = vld [vmem:[%s2522_s5 + $0x70] sm:$0xff] }
 0xce2   :  { %1703 = vmatmul.msk.f32.gmra.mxu0 %vm31_vm0, %v1304_v20 }
 0xce3   :  { %1551 = vmatpush.msrb.mxu3 %v1718_v19 }
 0xd23   :  { %v1345_v31 = vpop.f32.mrf.mxu0 }
 0xd24   :  { %v1346_v32 = vadd.f32 %v1345_v31, %v1305_v29  ;;  %v1717_v31 = vld [vmem:[%s2522_s5 + $0x68] sm:$0xff] }
 0xd25   :  { %1552 = vmatpush.msrb.mxu3 %v1717_v31 }
 0xd26   :  { %v1351_v18 = vadd.f32 %v1346_v32, %v2290_v37 }
 0xd28   :  { %v1353_v7 = vsel %vm31_vm0, %v1351_v18, 0.0 }
 0xd29   :  { %1354 = vadd.xlane.f32.xlu1 %v1353_v7  ;;  %v1716_v7 = vld [vmem:[%s2522_s5 + $0x60] sm:$0xff] }
 0xd2a   :  { %1553 = vmatpush.msrb.mxu3 %v1716_v7 }
 0xd5f   :  { %v1348_v8 = vpop.f32.mrf.mxu0 }
 0xd60   :  { %v1349_v28 = vadd.f32 %v1348_v8, %v1305_v29 }
 0xd62   :  { %v1352_v9 = vadd.f32 %v1349_v28, %v2295_v48  ;;  %v1707_v48 = vld [vmem:[%s2521_s4 + $0x38] sm:$0xff] }
 0xd63   :  { %1427 = vmatpush.msrb.mxu1 %v1707_v48  ;;  %v1715_v28 = vld [vmem:[%s2522_s5 + $0x58] sm:$0xff] }
 0xd64   :  { %v1356_v11 = vsel %vm31_vm0, %v1352_v9, 0.0  ;;  %1554 = vmatpush.msrb.mxu3 %v1715_v28 }
 0xd65   :  { %1357 = vadd.xlane.f32.xlu0 %v1356_v11  ;;  %1428 = vmatpush.msrb.mxu1 %v1706_v42 }
 0xd67   :  { %1429 = vmatpush.msrb.mxu1 %v1705_v43 }
 0xd69   :  { %1430 = vmatpush.msrb.mxu1 %v1704_v27 }
 0xd9c   :  { %v1355_v13 = vpop.xlane.xlu1 %1354 }
 0xd9d   :  { %v1359_v33 = vmul.f32 %v1355_v13, %v1990_v10  ;;  %v1714_v13 = vld [vmem:[%s2522_s5 + $0x50] sm:$0xff] }
 0xd9e   :  { %1555 = vmatpush.msrb.mxu3 %v1714_v13 }
 0xd9f   :  { %v1361_v34 = vsub.f32 %v1351_v18, %v1359_v33 }
 0xda1   :  { %v1363_v36 = vmul.f32 %v1361_v34, %v1361_v34 }
 0xda3   :  { %v1365_v30 = vsel %vm31_vm0, %v1363_v36, 0.0 }
 0xda4   :  { %1366 = vadd.xlane.f32.xlu2 %v1365_v30  ;;  %v1712_v30 = vld [vmem:[%s2522_s5 + $0x40] sm:$0xff] }
 0xdd8   :  { %v1358_v38 = vpop.xlane.xlu0 %1357 }
 0xdd9   :  { %v1360_v37 = vmul.f32 %v1358_v38, %v1990_v10 }
 0xddb   :  { %v1362_v39 = vsub.f32 %v1352_v9, %v1360_v37 }
 0xddd   :  { %v1364_v40 = vmul.f32 %v1362_v39, %v1362_v39 }
 0xddf   :  { %v1368_v41 = vsel %vm31_vm0, %v1364_v40, 0.0 }
 0xde0   :  { %1369 = vadd.xlane.f32.xlu1 %v1368_v41 }
 0xe17   :  { %v1367_v45 = vpop.xlane.xlu2 %1366 }
 0xe18   :  { %v1371_v46 = vmul.f32 %v1367_v45, %v1990_v10 }
 0xe1a   :  { %v1373_v55 = vadd.f32 1e-05, %v1371_v46 }
 0xe1c   :  { %1884 = vrsqrt.f32 %v1373_v55  ;;  %vm1381_vm9 = vweird.f32 %v1373_v55 }
 0xe22   :  { %v1885_v44 = vpop.eup %1884 }
 0xe23   :  { %v1376_v47 = vmul.f32 %v1885_v44, %v1373_v55  ;;  %vm1382_vm8 = vweird.f32 %v1885_v44 }
 0xe24   :  { %vm1383_vm10 = vmor %vm1381_vm9, %vm1382_vm8 }
 0xe25   :  { %v1377_v51 = vmul.f32 %v1885_v44, %v1376_v47 }
 0xe27   :  { %v1378_v49 = vmul.f32 0.5, %v1377_v51 }
 0xe29   :  { %v1379_v35 = vsub.f32 1.5, %v1378_v49 }
 0xe2b   :  { %v1380_v54 = vmul.f32 %v1885_v44, %v1379_v35 }
 0xe2d   :  { %v1384_v52 = vsel %vm1383_vm10, %v1885_v44, %v1380_v54 }
 0xe2e   :  { %v1395_v53 = vmul.f32 %v1384_v52, %v1361_v34  ;;  %v1713_v34 = vld [vmem:[%s2522_s5 + $0x48] sm:$0xff]  ;;  %s1940_s5 = smov [#allocation2]  }
 0xe2f   :  { %1556 = vmatpush.msrb.mxu3 %v1713_v34  ;;  %s1623_s6 = sshll.u32 %s1940_s5, 4  ;;  %s1624_s6 = int_to_ptr.vmem [resolvable:$true] %s1623_s6 }
 0xe30   :  { %v1398_v58 = vmul.f32 %v1397_v56, %v1395_v53 }
 0xe31   :  { %1557 = vmatpush.msrb.mxu3 %v1712_v30 }
 0xe32   :  { %v2458_v60 = vadd.f32 %v1400_v57, %v1398_v58 }
 0xe34   :  { %1708 = vmatmul.msk.f32.vlgmr.msrb.gmra.mxu1 %vm31_vm0, %v2458_v60 }
 0xe53   :  { %v1370_v61 = vpop.xlane.xlu1 %1369 }
 0xe54   :  { %v1372_v62 = vmul.f32 %v1370_v61, %v1990_v10 }
 0xe56   :  { %v1374_v1 = vadd.f32 1e-05, %v1372_v62 }
 0xe58   :  { %1886 = vrsqrt.f32 %v1374_v1  ;;  %vm1391_vm7 = vweird.f32 %v1374_v1 }
 0xe5e   :  { %v1887_v63 = vpop.eup %1886 }
 0xe5f   :  { %v1386_v2 = vmul.f32 %v1887_v63, %v1374_v1  ;;  %vm1392_vm5 = vweird.f32 %v1887_v63 }
 0xe60   :  { %vm1393_vm11 = vmor %vm1391_vm7, %vm1392_vm5 }
 0xe61   :  { %v1387_v21 = vmul.f32 %v1887_v63, %v1386_v2 }
 0xe63   :  { %v1388_v22 = vmul.f32 0.5, %v1387_v21 }
 0xe65   :  { %v1389_v59 = vsub.f32 1.5, %v1388_v22 }
 0xe67   :  { %v1390_v25 = vmul.f32 %v1887_v63, %v1389_v59 }
 0xe69   :  { %v1394_v3 = vsel %vm1393_vm11, %v1887_v63, %v1390_v25 }
 0xe6a   :  { %v1396_v4 = vmul.f32 %v1394_v3, %v1362_v39 }
 0xe6c   :  { %v1399_v23 = vmul.f32 %v1397_v56, %v1396_v4 }
 0xe6e   :  { %v2463_v24 = vadd.f32 %v1400_v57, %v1399_v23 }
 0xe70   :  { %1709 = vmatmul.msk.f32.gmra.mxu1 %vm31_vm0, %v2463_v24 }
 0xeb1   :  { %v1432_v5 = vpop.f32.mrf.mxu1 }
 0xeb2   :  { %v1433_v6 = vadd.f32 %v1432_v5, %v1408_v26 }
 0xeb4   :  { %v1440_v0 = vmul.f32 0.70710677, %v1433_v6  ;;  %v1438_v58 = vmul.f32 0.5, %v1433_v6 }
 0xeb6   :  { %v1442_v14 = vmul.f32 %v1440_v0, %v1440_v0 }
 0xeb8   :  { %v1443_v15 = vmin.f32 %v1442_v14, 16.0 }
 0xeba   :  { %v1444_v12 = vmul.f32 2.1237322e-06, %v1443_v15  ;;  %v1455_v17 = vmul.f32 3.8918573e-05, %v1443_v15 }
 0xebc   :  { %v1445_v20 = vadd.f32 0.00028619796, %v1444_v12  ;;  %v1456_v29 = vadd.f32 0.001143296, %v1455_v17 }
 0xebe   :  { %v1446_v32 = vmul.f32 %v1445_v20, %v1443_v15  ;;  %v1457_v18 = vmul.f32 %v1456_v29, %v1443_v15 }
 0xec0   :  { %v1458_v8 = vadd.f32 0.014752088, %v1457_v18  ;;  %v1447_v9 = vadd.f32 0.0036580483, %v1446_v32 }
 0xec2   :  { %v1459_v11 = vmul.f32 %v1458_v8, %v1443_v15  ;;  %v1448_v36 = vmul.f32 %v1447_v9, %v1443_v15 }
 0xec4   :  { %v1460_v33 = vadd.f32 0.112945676, %v1459_v11  ;;  %v1449_v39 = vadd.f32 0.05243302, %v1448_v36 }
 0xec6   :  { %v1461_v38 = vmul.f32 %v1460_v33, %v1443_v15  ;;  %v1450_v48 = vmul.f32 %v1449_v39, %v1443_v15 }
 0xec8   :  { %v1462_v37 = vadd.f32 0.4994258, %v1461_v38  ;;  %v1451_v42 = vadd.f32 0.18741608, %v1450_v48 }
 0xeca   :  { %v1463_v40 = vmul.f32 %v1462_v37, %v1443_v15  ;;  %v1452_v27 = vmul.f32 %v1451_v42, %v1443_v15  ;;  %v1535_v42 = vperm.slane %v2302_v50, 5 }
 0xecc   :  { %v1464_v41 = vadd.f32 1.0, %v1463_v40  ;;  %v1453_v44 = vadd.f32 1.1283791, %v1452_v27 }
 0xece   :  { %1888 = vrcp.f32 %v1464_v41  ;;  %v1476_v55 = vand.u32 2147483648, %v1464_v41  ;;  %v1474_v51 = vand.u32 2147483647, %v1464_v41  ;;  %vm1470_vm13 = vweird.f32 %v1464_v41 }
 0xecf   :  { %v1454_v54 = vmul.f32 %v1453_v44, %v1440_v0 }
 0xed0   :  { %v1477_v35 = vor.u32 1.1754944e-38, %v1476_v55  ;;  %vm1475_vm15 = vcmp.eq.f32.partialorder %v1474_v51, 8.507059e+37 }
 0xed4   :  { %v1889_v43 = vpop.eup %1888 }
 0xed5   :  { %v1466_v45 = vmul.f32 %v1889_v43, %v1464_v41  ;;  %vm1471_vm12 = vweird.f32 %v1889_v43 }
 0xed6   :  { %vm1472_vm14 = vmor %vm1470_vm13, %vm1471_vm12 }
 0xed7   :  { %v1467_v46 = vsub.f32 1.0, %v1466_v45 }
 0xed9   :  { %v1468_v47 = vmul.f32 %v1889_v43, %v1467_v46 }
 0xedb   :  { %v1469_v49 = vadd.f32 %v1889_v43, %v1468_v47 }
 0xedd   :  { %v1473_v56 = vsel %vm1472_vm14, %v1889_v43, %v1469_v49 }
 0xede   :  { %v1478_v52 = vsel %vm1475_vm15, %v1477_v35, %v1473_v56 }
 0xedf   :  { %v1479_v53 = vmul.f32 %v1478_v52, %v1454_v54 }
 0xee1   :  { %v1710_v57 = vclamps-f32 %v1479_v53, 1.0 }
 0xee3   :  { %v1522_v61 = vadd.f32 1.0, %v1710_v57 }
 0xee5   :  { %v1524_v62 = vmul.f32 %v1522_v61, %v1438_v58 }
 0xee7   :  { %1720 = vmatmul.msk.f32.vlgmr.msrb.gmra.mxu3 %vm772_vm6, %v1524_v62 }
 0xeed   :  { %v1435_v1 = vpop.f32.mrf.mxu1 }
 0xeee   :  { %v1436_v63 = vadd.f32 %v1435_v1, %v1408_v26 }
 0xef0   :  { %v1441_v2 = vmul.f32 0.70710677, %v1436_v63  ;;  %v1439_v40 = vmul.f32 0.5, %v1436_v63 }
 0xef2   :  { %v1482_v21 = vmul.f32 %v1441_v2, %v1441_v2 }
 0xef4   :  { %v1483_v22 = vmin.f32 %v1482_v21, 16.0 }
 0xef6   :  { %v1484_v59 = vmul.f32 2.1237322e-06, %v1483_v22  ;;  %v1495_v25 = vmul.f32 3.8918573e-05, %v1483_v22 }
 0xef8   :  { %v1485_v3 = vadd.f32 0.00028619796, %v1484_v59  ;;  %v1496_v4 = vadd.f32 0.001143296, %v1495_v25 }
 0xefa   :  { %v1486_v23 = vmul.f32 %v1485_v3, %v1483_v22  ;;  %v1497_v5 = vmul.f32 %v1496_v4, %v1483_v22  ;;  %v1611_v3 = vperm.slane %v2302_v50, 6 }
 0xefc   :  { %v1498_v0 = vadd.f32 0.014752088, %v1497_v5  ;;  %v1487_v14 = vadd.f32 0.0036580483, %v1486_v23  ;;  %v1614_v5 = vperm.slane %v2302_v50, 7 }
 0xefe   :  { %v1499_v6 = vmul.f32 %v1498_v0, %v1483_v22  ;;  %v1488_v16 = vmul.f32 %v1487_v14, %v1483_v22 }
 0xf00   :  { %v1500_v15 = vadd.f32 0.112945676, %v1499_v6  ;;  %v1489_v19 = vadd.f32 0.05243302, %v1488_v16 }
 0xf02   :  { %v1501_v12 = vmul.f32 %v1500_v15, %v1483_v22  ;;  %v1490_v26 = vmul.f32 %v1489_v19, %v1483_v22 }
 0xf04   :  { %v1502_v17 = vadd.f32 0.4994258, %v1501_v12  ;;  %v1491_v31 = vadd.f32 0.18741608, %v1490_v26 }
 0xf06   :  { %v1503_v20 = vmul.f32 %v1502_v17, %v1483_v22  ;;  %v1492_v18 = vmul.f32 %v1491_v31, %v1483_v22 }
 0xf08   :  { %v1504_v29 = vadd.f32 1.0, %v1503_v20  ;;  %v1493_v9 = vadd.f32 1.1283791, %v1492_v18 }
 0xf0a   :  { %1890 = vrcp.f32 %v1504_v29  ;;  %v1516_v28 = vand.u32 2147483648, %v1504_v29  ;;  %v1514_v13 = vand.u32 2147483647, %v1504_v29  ;;  %vm1510_vm2 = vweird.f32 %v1504_v29 }
 0xf0b   :  { %v1494_v36 = vmul.f32 %v1493_v9, %v1441_v2 }
 0xf0c   :  { %v1517_v34 = vor.u32 1.1754944e-38, %v1516_v28  ;;  %vm1515_vm4 = vcmp.eq.f32.partialorder %v1514_v13, 8.507059e+37 }
 0xf10   :  { %v1891_v32 = vpop.eup %1890 }
 0xf11   :  { %v1506_v7 = vmul.f32 %v1891_v32, %v1504_v29  ;;  %vm1511_vm1 = vweird.f32 %v1891_v32 }
 0xf12   :  { %vm1512_vm3 = vmor %vm1510_vm2, %vm1511_vm1 }
 0xf13   :  { %v1507_v8 = vsub.f32 1.0, %v1506_v7 }
 0xf15   :  { %v1508_v11 = vmul.f32 %v1891_v32, %v1507_v8 }
 0xf17   :  { %v1509_v33 = vadd.f32 %v1891_v32, %v1508_v11 }
 0xf19   :  { %v1513_v30 = vsel %vm1512_vm3, %v1891_v32, %v1509_v33 }
 0xf1a   :  { %v1518_v38 = vsel %vm1515_vm4, %v1517_v34, %v1513_v30 }
 0xf1b   :  { %v1519_v37 = vmul.f32 %v1518_v38, %v1494_v36 }
 0xf1d   :  { %v1711_v39 = vclamps-f32 %v1519_v37, 1.0 }
 0xf1f   :  { %v1523_v41 = vadd.f32 1.0, %v1711_v39 }
 0xf21   :  { %v1525_v48 = vmul.f32 %v1523_v41, %v1439_v40 }
 0xf23   :  { %1721 = vmatmul.msk.f32.gmra.mxu3 %vm772_vm6, %v1525_v48 }
 0xf6a   :  { %v1559_v43 = vpop.f32.mrf.mxu3 }
 0xf6b   :  { %v1560_v27 = vadd.f32 %v1559_v43, %v1535_v42 }
 0xf6d   :  { %v1565_v45 = vadd.f32 %v1560_v27, %v2458_v60 }
 0xf6f   :  { %v1567_v46 = vsel %vm31_vm0, %v1565_v45, 0.0 }
 0xf70   :  { %1568 = vadd.xlane.f32.xlu0 %v1567_v46 }
 0xfa6   :  { %v1562_v55 = vpop.f32.mrf.mxu3 }
 0xfa7   :  { %v1563_v44 = vadd.f32 %v1562_v55, %v1535_v42 }
 0xfa9   :  { %v1566_v47 = vadd.f32 %v1563_v44, %v2463_v24 }
 0xfab   :  { %v1570_v51 = vsel %vm31_vm0, %v1566_v47, 0.0 }
 0xfac   :  { %1571 = vadd.xlane.f32.xlu1 %v1570_v51 }
 0xfe3   :  { %v1569_v49 = vpop.xlane.xlu0 %1568 }
 0xfe4   :  { %v1573_v35 = vmul.f32 %v1569_v49, %v1990_v10 }
 0xfe6   :  { %v1575_v54 = vsub.f32 %v1565_v45, %v1573_v35 }
 0xfe8   :  { %v1577_v56 = vmul.f32 %v1575_v54, %v1575_v54 }
 0xfea   :  { %v1579_v52 = vsel %vm31_vm0, %v1577_v56, 0.0 }
 0xfeb   :  { %1580 = vadd.xlane.f32.xlu0 %v1579_v52 }
0x101f   :  { %v1572_v53 = vpop.xlane.xlu1 %1571 }
0x1020   :  { %v1574_v60 = vmul.f32 %v1572_v53, %v1990_v10 }
0x1022   :  { %v1576_v57 = vsub.f32 %v1566_v47, %v1574_v60 }
0x1024   :  { %v1578_v58 = vmul.f32 %v1576_v57, %v1576_v57 }
0x1026   :  { %v1582_v61 = vsel %vm31_vm0, %v1578_v58, 0.0 }
0x1027   :  { %1583 = vadd.xlane.f32.xlu2 %v1582_v61 }
0x105e   :  { %v1581_v24 = vpop.xlane.xlu0 %1580 }
0x105f   :  { %v1585_v62 = vmul.f32 %v1581_v24, %v1990_v10 }
0x1061   :  { %v1587_v1 = vadd.f32 1e-05, %v1585_v62 }
0x1063   :  { %1892 = vrsqrt.f32 %v1587_v1  ;;  %vm1595_vm8 = vweird.f32 %v1587_v1 }
0x1069   :  { %v1893_v63 = vpop.eup %1892 }
0x106a   :  { %v1590_v2 = vmul.f32 %v1893_v63, %v1587_v1  ;;  %vm1596_vm6 = vweird.f32 %v1893_v63 }
0x106b   :  { %vm1597_vm9 = vmor %vm1595_vm8, %vm1596_vm6 }
0x106c   :  { %v1591_v21 = vmul.f32 %v1893_v63, %v1590_v2 }
0x106e   :  { %v1592_v22 = vmul.f32 0.5, %v1591_v21 }
0x1070   :  { %v1593_v59 = vsub.f32 1.5, %v1592_v22 }
0x1072   :  { %v1594_v25 = vmul.f32 %v1893_v63, %v1593_v59 }
0x1074   :  { %v1598_v4 = vsel %vm1597_vm9, %v1893_v63, %v1594_v25 }
0x1075   :  { %v1609_v23 = vmul.f32 %v1598_v4, %v1575_v54 }
0x1077   :  { %v1612_v0 = vmul.f32 %v1611_v3, %v1609_v23 }
0x1079   :  { %v1615_v14 = vadd.f32 %v1614_v5, %v1612_v0 }
0x107b   :  { %1617 = vst.msk [vmem:[#allocation2] sm:$0xff] %vm31_vm0, %v1615_v14 }
0x109a   :  { %v1584_v6 = vpop.xlane.xlu2 %1583 }
0x109b   :  { %v1586_v15 = vmul.f32 %v1584_v6, %v1990_v10 }
0x109d   :  { %v1588_v16 = vadd.f32 1e-05, %v1586_v15 }
0x109f   :  { %1894 = vrsqrt.f32 %v1588_v16  ;;  %vm1605_vm5 = vweird.f32 %v1588_v16 }
0x10a5   :  { %v1895_v12 = vpop.eup %1894 }
0x10a6   :  { %v1600_v17 = vmul.f32 %v1895_v12, %v1588_v16  ;;  %vm1606_vm10 = vweird.f32 %v1895_v12 }
0x10a7   :  { %vm1607_vm7 = vmor %vm1605_vm5, %vm1606_vm10 }
0x10a8   :  { %v1601_v19 = vmul.f32 %v1895_v12, %v1600_v17 }
0x10aa   :  { %v1602_v20 = vmul.f32 0.5, %v1601_v19 }
0x10ac   :  { %v1603_v29 = vsub.f32 1.5, %v1602_v20 }
0x10ae   :  { %v1604_v26 = vmul.f32 %v1895_v12, %v1603_v29 }
0x10b0   :  { %v1608_v31 = vsel %vm1607_vm7, %v1895_v12, %v1604_v26 }
0x10b1   :  { %v1610_v50 = vmul.f32 %v1608_v31, %v1576_v57 }
0x10b3   :  { %v1613_v10 = vmul.f32 %v1611_v3, %v1610_v50 }
0x10b5   :  { %v1616_v32 = vadd.f32 %v1614_v5, %v1613_v10 }
0x10b7   :  { %1618 = vst.msk [vmem:[#allocation2 + $0x8] sm:$0xff] %vm31_vm0, %v1616_v32 }
0x10b8   :  { %1631 = dma.vmem_to_hbm [thread:$0]  %s1624_s6, 256, %s1626_s19, [#allocation3], %s1941_s1, %s1941_s1, %s1937_s9  }
0x10b9   :  { %1922 = dma.done.wait [#allocation3], 256  }
0x10ba   :  { %1923 = vsyncadd [#allocation3], 4294967040 }
0x10bb   :  { %1636 = vsyncpa [#allocation3], 1 }

</bundles_post_ra>
